<compile_context>
chip_gen: v5e
topology: v5e:2x2
jax: 0.10.0
libtpu: 0.0.40
codegen_flags: <defaults>
</compile_context>

<pallas_src>
import math

import jax
import jax.numpy as jnp
from jax.experimental import pallas as pl
from jax.experimental.pallas import tpu as pltpu


def _round_up(x: int, m: int) -> int:
    return ((x + m - 1) // m) * m


def _pick_tile(n_pad: int, target: int, granule: int = 128) -> int:
    """Largest multiple of `granule` that divides n_pad and is <= target."""
    target = max(granule, target)
    nblk = n_pad // granule
    best = 1
    for d in range(1, nblk + 1):
        if nblk % d == 0 and d * granule <= target:
            best = d
    return best * granule


def _build_kernel(has_bias: bool, cache_support: bool, acc_in_out: bool):
    """Fused GCN kernel body, statically specialized on bias / cache / output path."""

    def kernel(*refs):
        idx = 0
        x_ref, w_ref, adj_ref = refs[0], refs[1], refs[2]
        idx = 3
        bias_ref = None
        if has_bias:
            bias_ref = refs[idx]
            idx += 1
        o_ref = refs[idx]
        idx += 1
        sup_ref = None
        if cache_support:
            sup_ref = refs[idx]
            idx += 1
        acc_ref = None if acc_in_out else refs[idx]

        i = pl.program_id(0)
        k = pl.program_id(1)

        if cache_support:
            # Populate the support cache only during the first m-tile; all
            # later m-tiles reuse it (m axis is sequential/"arbitrary").
            @pl.when(i == 0)
            def _():
                s = jnp.dot(x_ref[...], w_ref[...],
                            preferred_element_type=jnp.float32)
                sup_ref[k] = s.astype(sup_ref.dtype)

            sup = sup_ref[k]                       # (tk, out_f), compute dtype
        else:
            s = jnp.dot(x_ref[...], w_ref[...],
                        preferred_element_type=jnp.float32)
            # Keep the second matmul in the compute dtype (native MXU path).
            sup = s.astype(x_ref.dtype)

        partial = jnp.dot(adj_ref[...], sup,
                          preferred_element_type=jnp.float32)   # (tm, out_f) f32

        if acc_in_out:
            # f32 output: accumulate directly into the resident output block.
            @pl.when(k == 0)
            def _():
                if bias_ref is not None:
                    o_ref[...] = jnp.broadcast_to(
                        bias_ref[...], o_ref.shape).astype(jnp.float32)
                else:
                    o_ref[...] = jnp.zeros_like(o_ref)

            o_ref[...] += partial
        else:
            @pl.when(k == 0)
            def _():
                acc_ref[...] = jnp.zeros_like(acc_ref)

            acc_ref[...] += partial

            @pl.when(k == pl.num_programs(1) - 1)
            def _():
                res = acc_ref[...]
                if bias_ref is not None:
                    res = res + bias_ref[...]       # bias added in f32
                o_ref[...] = res.astype(o_ref.dtype)

    return kernel


def graph_convolution(infeatn, adj, weight, bias=None, *,
                      compute_dtype=jnp.bfloat16,
                      tile_m=512, tile_k=512,
                      support_cache_limit_bytes=12 * 1024 * 1024):
    """Pallas implementation of GraphConvolution.forward.

    infeatn: (N, in_f), adj: (N, N) dense, weight: (in_f, out_f),
    bias: (out_f,) or None.  Returns (N, out_f) in infeatn.dtype.
    MXU operands are cast to `compute_dtype`; accumulation and the bias add
    stay in f32.
    """
    infeatn = jnp.asarray(infeatn)
    adj = jnp.asarray(adj)
    weight = jnp.asarray(weight)

    N, in_f = infeatn.shape
    assert adj.shape == (N, N), adj.shape
    in_f2, out_f = weight.shape
    assert in_f == in_f2
    out_dtype = infeatn.dtype

    # Pad the node axis only to the 128 lane granule (not to the tile size) so
    # padding overhead on the N^2 adj term stays <= one 128-row/col border.
    n_pad = _round_up(N, 128)
    if n_pad != N:
        infeatn = jnp.pad(infeatn, ((0, n_pad - N), (0, 0)))
        adj = jnp.pad(adj, ((0, n_pad - N), (0, n_pad - N)))

    x_c = infeatn.astype(compute_dtype)
    adj_c = adj.astype(compute_dtype)
    w_c = weight.astype(compute_dtype)

    tm = _pick_tile(n_pad, tile_m)
    tk = _pick_tile(n_pad, tile_k)
    num_m = n_pad // tm
    num_k = n_pad // tk

    itemsize = jnp.dtype(compute_dtype).itemsize
    sup_cache_bytes = num_k * tk * out_f * itemsize
    cache_support = sup_cache_bytes <= support_cache_limit_bytes
    acc_in_out = jnp.dtype(out_dtype) == jnp.dtype(jnp.float32)
    has_bias = bias is not None

    if cache_support:
        # For i > 0 the X block is not needed; returning a constant block lets
        # Pallas' consecutive-block dedup skip the redundant X DMA.
        x_map = lambda i, k: (jnp.where(i == 0, k, 0), 0)
    else:
        x_map = lambda i, k: (k, 0)

    inputs = [x_c, w_c, adj_c]
    in_specs = [
        pl.BlockSpec((tk, in_f), x_map),                    # X rows for k-tile
        pl.BlockSpec((in_f, out_f), lambda i, k: (0, 0)),   # W fully resident
        pl.BlockSpec((tm, tk), lambda i, k: (i, k)),        # adj block (i, k)
    ]
    if has_bias:
        bias_row = jnp.asarray(bias, dtype=jnp.float32).reshape(1, out_f)
        inputs.append(bias_row)
        in_specs.append(pl.BlockSpec((1, out_f), lambda i, k: (0, 0)))

    scratch_shapes = []
    if cache_support:
        scratch_shapes.append(pltpu.VMEM((num_k, tk, out_f), compute_dtype))
    if not acc_in_out:
        scratch_shapes.append(pltpu.VMEM((tm, out_f), jnp.float32))

    # The support cache is only valid if every m-tile runs on the core that
    # populated it at i == 0, so the m axis must be sequential in that case.
    # The recompute fallback keeps m "parallel" (megacore-shardable on v7x).
    m_sem = "arbitrary" if cache_support else "parallel"

    grid_spec = pltpu.PrefetchScalarGridSpec(
        num_scalar_prefetch=0,
        grid=(num_m, num_k),
        in_specs=in_specs,
        out_specs=pl.BlockSpec((tm, out_f), lambda i, k: (i, 0)),
        scratch_shapes=scratch_shapes,
    )

    out = pl.pallas_call(
        _build_kernel(has_bias, cache_support, acc_in_out),
        out_shape=jax.ShapeDtypeStruct((n_pad, out_f), out_dtype),
        grid_spec=grid_spec,
        compiler_params=pltpu.CompilerParams(
            dimension_semantics=(m_sem, "arbitrary"),
        ),
    )(*inputs)

    return out[:N]


if __name__ == "__main__":
    # N is intentionally NOT a multiple of 128 so the padding path is
    # exercised (300 -> 384, tiles become 384x384 -> grid (1, 1); the
    # forced-no-cache run below also exercises the recompute branch).
    N_NODES = 300
    IN_FEATURES = 128
    OUT_FEATURES = 128

    key = jax.random.PRNGKey(0)
    k_x, k_adj, k_w, k_b = jax.random.split(key, 4)

    # Node features and a dense, row-normalized adjacency matrix.
    infeatn = jax.random.normal(k_x, (N_NODES, IN_FEATURES), dtype=jnp.float32)
    adj = (jax.random.uniform(k_adj, (N_NODES, N_NODES)) > 0.9).astype(jnp.float32)
    adj = adj + jnp.eye(N_NODES, dtype=jnp.float32)
    adj = adj / jnp.sum(adj, axis=1, keepdims=True)

    # Matches reset_parameters(): stdv = 1/sqrt(out_features); uniform(-stdv, stdv).
    stdv = 1.0 / math.sqrt(OUT_FEATURES)
    weight = jax.random.uniform(
        k_w, (IN_FEATURES, OUT_FEATURES), minval=-stdv, maxval=stdv, dtype=jnp.float32
    )
    bias = jax.random.uniform(
        k_b, (OUT_FEATURES,), minval=-stdv, maxval=stdv, dtype=jnp.float32
    )

    hp = jax.lax.Precision.HIGHEST
    ref_f32 = (
        jnp.dot(adj, jnp.dot(infeatn, weight, precision=hp), precision=hp)
        + bias[None, :]
    )

    def _bf16_ref(x, a, w, b):
        xr = x.astype(jnp.bfloat16).astype(jnp.float32)
        ar = a.astype(jnp.bfloat16).astype(jnp.float32)
        wr = w.astype(jnp.bfloat16).astype(jnp.float32)
        sup = jnp.dot(xr, wr, precision=hp).astype(jnp.bfloat16).astype(jnp.float32)
        out = jnp.dot(ar, sup, precision=hp)
        return out if b is None else out + b[None, :]

    # 1) exact-f32 compute path (tight tolerance).
    out_f32 = jax.block_until_ready(
        graph_convolution(infeatn, adj, weight, bias, compute_dtype=jnp.float32)
    )
    assert out_f32.shape == (N_NODES, OUT_FEATURES)
    err = float(jnp.max(jnp.abs(out_f32 - ref_f32)))
    assert err < 1e-3, f"f32 path max err {err}"

    # 2) default bf16 compute path (compare to bf16-rounded reference, plus a
    #    loose sanity check against the exact f32 reference).
    out_bf = jax.block_until_ready(graph_convolution(infeatn, adj, weight, bias))
    ref_bf = _bf16_ref(infeatn, adj, weight, bias)
    err = float(jnp.max(jnp.abs(out_bf - ref_bf)))
    assert err < 2e-2, f"bf16 path max err {err}"
    err = float(jnp.max(jnp.abs(out_bf - ref_f32)))
    assert err < 5e-2, f"bf16 vs f32 ref max err {err}"

    # 3) bias=None + support cache disabled (exercises the recompute branch
    #    with the 'parallel' m axis).
    out_nb = jax.block_until_ready(
        graph_convolution(infeatn, adj, weight, None, support_cache_limit_bytes=0)
    )
    ref_nb = _bf16_ref(infeatn, adj, weight, None)
    err = float(jnp.max(jnp.abs(out_nb - ref_nb)))
    assert err < 2e-2, f"no-bias path max err {err}"

    print("KERNEL_OK")
</pallas_src>

<mosaic_0001>
module attributes {stable_mosaic.version = 11 : i64} {
  func.func @kernel(%arg0: i32, %arg1: i32, %arg2: memref<384x128xf32, #tpu.memory_space<vmem>>, %arg3: memref<128x128xf32, #tpu.memory_space<vmem>>, %arg4: memref<384x384xf32, #tpu.memory_space<vmem>>, %arg5: memref<1x128xf32, #tpu.memory_space<vmem>>, %arg6: memref<384x128xf32, #tpu.memory_space<vmem>>, %arg7: memref<1x384x128xf32, #tpu.memory_space<vmem>>) attributes {dimension_semantics = [#tpu.dimension_semantics<arbitrary>, #tpu.dimension_semantics<arbitrary>], iteration_bounds = array<i64: 1, 1>, scalar_prefetch = 0 : i64, scratch_operands = 1 : i64, tpu.core_type = #tpu.core_type<tc>, window_params = [{transform_indices = @transform_0, window_bounds = array<i64: 384, 128>}, {pipeline_mode = #tpu.pipeline_mode<synchronous>, transform_indices = @transform_1, window_bounds = array<i64: 128, 128>}, {transform_indices = @transform_2, window_bounds = array<i64: 384, 384>}, {pipeline_mode = #tpu.pipeline_mode<synchronous>, transform_indices = @transform_3, window_bounds = array<i64: 1, 128>}, {transform_indices = @transform_4, window_bounds = array<i64: 384, 128>}]} {
    %c0_i32 = arith.constant 0 : i32
    %0 = arith.cmpi eq, %arg0, %c0_i32 : i32
    %1 = arith.extui %0 : i1 to i32
    %c0_i32_0 = arith.constant 0 : i32
    %2 = arith.cmpi ne, %1, %c0_i32_0 : i32
    scf.if %2 {
      %c0_10 = arith.constant 0 : index
      %c0_11 = arith.constant 0 : index
      %14 = vector.load %arg2[%c0_10, %c0_11] : memref<384x128xf32, #tpu.memory_space<vmem>>, vector<384x128xf32>
      %c0_12 = arith.constant 0 : index
      %c0_13 = arith.constant 0 : index
      %15 = vector.load %arg3[%c0_12, %c0_13] : memref<128x128xf32, #tpu.memory_space<vmem>>, vector<128x128xf32>
      %cst_14 = arith.constant dense<0.000000e+00> : vector<384x128xf32>
      %16 = tpu.matmul %14, %15, %cst_14 {dimension_numbers = #tpu.dot_dimension_numbers<[1], [0], [0], [1], [0, 0, 1, 1], [], []>} : vector<384x128xf32>, vector<128x128xf32>, vector<384x128xf32> -> vector<384x128xf32>
      %17 = arith.index_cast %arg1 : i32 to index
      %c0_15 = arith.constant 0 : index
      %c0_16 = arith.constant 0 : index
      %18 = vector.load %arg7[%17, %c0_15, %c0_16] : memref<1x384x128xf32, #tpu.memory_space<vmem>>, vector<1x384x128xf32>
      %19 = vector.shape_cast %18 : vector<1x384x128xf32> to vector<384x128xf32>
      %20 = vector.shape_cast %16 : vector<384x128xf32> to vector<1x384x128xf32>
      tpu.vector_store %arg7[%17, %c0_15, %c0_16], %20 {strides = array<i32>} : memref<1x384x128xf32, #tpu.memory_space<vmem>>, vector<1x384x128xf32>,
    } else {
    }
    %3 = arith.index_cast %arg1 : i32 to index
    %c0 = arith.constant 0 : index
    %c0_1 = arith.constant 0 : index
    %4 = vector.load %arg7[%3, %c0, %c0_1] : memref<1x384x128xf32, #tpu.memory_space<vmem>>, vector<1x384x128xf32>
    %5 = vector.shape_cast %4 : vector<1x384x128xf32> to vector<384x128xf32>
    %c0_2 = arith.constant 0 : index
    %c0_3 = arith.constant 0 : index
    %6 = vector.load %arg4[%c0_2, %c0_3] : memref<384x384xf32, #tpu.memory_space<vmem>>, vector<384x384xf32>
    %cst = arith.constant dense<0.000000e+00> : vector<384x128xf32>
    %7 = tpu.matmul %6, %5, %cst {dimension_numbers = #tpu.dot_dimension_numbers<[1], [0], [0], [1], [0, 0, 1, 1], [], []>} : vector<384x384xf32>, vector<384x128xf32>, vector<384x128xf32> -> vector<384x128xf32>
    %c0_i32_4 = arith.constant 0 : i32
    %8 = arith.cmpi eq, %arg1, %c0_i32_4 : i32
    %9 = arith.extui %8 : i1 to i32
    %c0_i32_5 = arith.constant 0 : i32
    %10 = arith.cmpi ne, %9, %c0_i32_5 : i32
    scf.if %10 {
      %c0_10 = arith.constant 0 : index
      %c0_11 = arith.constant 0 : index
      %14 = vector.load %arg5[%c0_10, %c0_11] : memref<1x128xf32, #tpu.memory_space<vmem>>, vector<1x128xf32>
      %15 = vector.shape_cast %14 : vector<1x128xf32> to vector<1x128xf32>
      %16 = vector.broadcast %15 : vector<1x128xf32> to vector<384x128xf32>
      %c0_12 = arith.constant 0 : index
      %c0_13 = arith.constant 0 : index
      %17 = vector.load %arg6[%c0_12, %c0_13] : memref<384x128xf32, #tpu.memory_space<vmem>>, vector<384x128xf32>
      tpu.vector_store %arg6[%c0_12, %c0_13], %16 {strides = array<i32>} : memref<384x128xf32, #tpu.memory_space<vmem>>, vector<384x128xf32>,
    } else {
    }
    %c0_6 = arith.constant 0 : index
    %c0_7 = arith.constant 0 : index
    %11 = vector.load %arg6[%c0_6, %c0_7] : memref<384x128xf32, #tpu.memory_space<vmem>>, vector<384x128xf32>
    %12 = arith.addf %11, %7 : vector<384x128xf32>
    %c0_8 = arith.constant 0 : index
    %c0_9 = arith.constant 0 : index
    %13 = vector.load %arg6[%c0_8, %c0_9] : memref<384x128xf32, #tpu.memory_space<vmem>>, vector<384x128xf32>
    tpu.vector_store %arg6[%c0_8, %c0_9], %12 {strides = array<i32>} : memref<384x128xf32, #tpu.memory_space<vmem>>, vector<384x128xf32>,
    return
  }
  func.func @transform_0(%arg0: i32, %arg1: i32) -> (i32, i32) {
    %c0_i32 = arith.constant 0 : i32
    %0 = arith.cmpi eq, %arg0, %c0_i32 : i32
    %c0_i32_0 = arith.constant 0 : i32
    %1 = arith.select %0, %arg1, %c0_i32_0 : i32
    %c0_i32_1 = arith.constant 0 : i32
    %c0_i32_2 = arith.constant 0 : i32
    return %1, %c0_i32_1 : i32, i32
  }
  func.func @transform_1(%arg0: i32, %arg1: i32) -> (i32, i32) {
    %c0_i32 = arith.constant 0 : i32
    %c0_i32_0 = arith.constant 0 : i32
    %c0_i32_1 = arith.constant 0 : i32
    return %c0_i32, %c0_i32_0 : i32, i32
  }
  func.func @transform_2(%arg0: i32, %arg1: i32) -> (i32, i32) {
    %c0_i32 = arith.constant 0 : i32
    return %arg0, %arg1 : i32, i32
  }
  func.func @transform_3(%arg0: i32, %arg1: i32) -> (i32, i32) {
    %c0_i32 = arith.constant 0 : i32
    %c0_i32_0 = arith.constant 0 : i32
    %c0_i32_1 = arith.constant 0 : i32
    return %c0_i32, %c0_i32_0 : i32, i32
  }
  func.func @transform_4(%arg0: i32, %arg1: i32) -> (i32, i32) {
    %c0_i32 = arith.constant 0 : i32
    %c0_i32_0 = arith.constant 0 : i32
    return %arg0, %c0_i32 : i32, i32
  }
}

</mosaic_0001>

<bundles_post_ra>
// kernel: tpu_custom_call.1
= control target key start
LH: loop header
LB: loop body
LE: loop exit
PB: predicated region body
PF: predicated region fallthrough
CT: control target
= control target key end

     0   :  { %9 = vsyncpa [#allocation4], 0  ;;  %s1484_s0 = inlined_call_operand.hbm [shape: f32[384,128], index: 0, kind: input, shape index: {}]   ;;  %s1485_s1 = inlined_call_operand.hbm [shape: f32[128,128], index: 1, kind: input, shape index: {}]   ;;  %s1486_s2 = inlined_call_operand.hbm [shape: f32[384,384], index: 2, kind: input, shape index: {}]   ;;  %s1487_s3 = inlined_call_operand.vmem [shape: f32[1,128], index: 3, kind: input, shape index: {}]   ;;  %s1488_s4 = inlined_call_operand.hbm [shape: f32[384,128], index: 4, kind: output, shape index: {}]  }
   0x1   :  { %10 = vsyncpa [#allocation7], 0 }
   0x2   :  { %11 = vsyncpa [#allocation5], 0  ;;  %s34_s17 = sshll.u32 %s1485_s1, 4  ;;  %s1362_s18 = smov [#allocation6]   ;;  %s35_s17 = int_to_ptr.hbm [resolvable:$true] %s34_s17 }
   0x3   :  { %s36_s19 = sshll.u32 %s1362_s18, 4  ;;  %s21_s22 = sshll.u32 %s1484_s0, 4  ;;  %s37_s19 = int_to_ptr.vmem [resolvable:$true] %s36_s19  ;;  %s22_s22 = int_to_ptr.hbm [resolvable:$true] %s21_s22 }
   0x4   :  { %s1363_s23 = smov 128   ;;  %s1364_s24 = smov 8  }
   0x5   :  { %42 = dma.hbm_to_vmem [thread:$0]  %s35_s17, 2048, %s37_s19, [#allocation7], %s1363_s23, %s1363_s23, %s1364_s24  }
   0x6   :  { %s1365_s25 = smov [#allocation3]   ;;  %s47_s1 = sshll.u32 %s1486_s2, 4  ;;  %s48_s1 = int_to_ptr.hbm [resolvable:$true] %s47_s1 }
   0x7   :  { %s23_s26 = sshll.u32 %s1365_s25, 4  ;;  %s1366_s0 = smov [#allocation8]   ;;  %s24_s26 = int_to_ptr.vmem [resolvable:$true] %s23_s26 }
   0x8   :  { %29 = dma.hbm_to_vmem [thread:$0]  %s22_s22, 6144, %s24_s26, [#allocation4], %s1363_s23, %s1363_s23, %s1364_s24  }
   0x9   :  { %s49_s29 = sshll.u32 %s1366_s0, 4  ;;  %s1367_s30 = smov 384   ;;  %s50_s29 = int_to_ptr.vmem [resolvable:$true] %s49_s29 }
   0xa   :  { %s1368_s5 = smov 24  }
   0xb   :  { %55 = dma.hbm_to_vmem [thread:$0]  %s48_s1, 18432, %s50_s29, [#allocation7], %s1367_s30, %s1367_s30, %s1368_s5  }
   0xc   :  { %1356 = dma.done.wait [#allocation4], 6144  }
   0xd   :  { %1357 = vsyncadd [#allocation4], 4294961152 }
   0xe   :  { %1358 = dma.done.wait [#allocation7], 20480  }
   0xf   :  { %1359 = vsyncadd [#allocation7], 4294946816  ;;  %v140_v0 = vld [vmem:[#allocation6 + $0x78] sm:$0xff]  ;;  %v139_v1 = vld [vmem:[#allocation6 + $0x70] sm:$0xff]  ;;  %s1235_s10 = sshll.u32 %s1488_s4, 4  ;;  %s1236_s10 = int_to_ptr.hbm [resolvable:$true] %s1235_s10 }
  0x10   :  { %141 = vmatpush.msra.mxu0 %v140_v0  ;;  %v138_v2 = vld [vmem:[#allocation6 + $0x68] sm:$0xff]  ;;  %v137_v3 = vld [vmem:[#allocation6 + $0x60] sm:$0xff]  ;;  %v136_v4 = vld [vmem:[#allocation6 + $0x58] sm:$0xff] }
  0x11   :  { %v135_v5 = vld [vmem:[#allocation6 + $0x50] sm:$0xff]  ;;  %v134_v6 = vld [vmem:[#allocation6 + $0x48] sm:$0xff]  ;;  %v133_v7 = vld [vmem:[#allocation6 + $0x40] sm:$0xff] }
  0x12   :  { %142 = vmatpush.msra.mxu0 %v139_v1  ;;  %v132_v8 = vld [vmem:[#allocation6 + $0x38] sm:$0xff]  ;;  %v131_v9 = vld [vmem:[#allocation6 + $0x30] sm:$0xff]  ;;  %v130_v10 = vld [vmem:[#allocation6 + $0x28] sm:$0xff] }
  0x13   :  { %v129_v11 = vld [vmem:[#allocation6 + $0x20] sm:$0xff]  ;;  %v128_v12 = vld [vmem:[#allocation6 + $0x18] sm:$0xff]  ;;  %v127_v13 = vld [vmem:[#allocation6 + $0x10] sm:$0xff] }
  0x14   :  { %143 = vmatpush.msra.mxu0 %v138_v2  ;;  %v126_v14 = vld [vmem:[#allocation6 + $0x8] sm:$0xff]  ;;  %v125_v15 = vld [vmem:[#allocation6] sm:$0xff]  ;;  %v79_v18 = vld [vmem:[#allocation3 + $0x10] sm:$0xff] }
  0x15   :  { %v77_v16 = vld [vmem:[#allocation3] sm:$0xff]  ;;  %v78_v17 = vld [vmem:[#allocation3 + $0x8] sm:$0xff]  ;;  %v80_v19 = vld [vmem:[#allocation3 + $0x18] sm:$0xff] }
  0x16   :  { %144 = vmatpush.msra.mxu0 %v137_v3  ;;  %v81_v20 = vld [vmem:[#allocation3 + $0x20] sm:$0xff]  ;;  %v82_v21 = vld [vmem:[#allocation3 + $0x28] sm:$0xff]  ;;  %v83_v22 = vld [vmem:[#allocation3 + $0x30] sm:$0xff] }
  0x17   :  { %v84_v23 = vld [vmem:[#allocation3 + $0x38] sm:$0xff]  ;;  %v85_v24 = vld [vmem:[#allocation3 + $0x40] sm:$0xff]  ;;  %v86_v25 = vld [vmem:[#allocation3 + $0x48] sm:$0xff] }
  0x18   :  { %145 = vmatpush.msra.mxu0 %v136_v4  ;;  %v87_v26 = vld [vmem:[#allocation3 + $0x50] sm:$0xff]  ;;  %v88_v27 = vld [vmem:[#allocation3 + $0x58] sm:$0xff]  ;;  %v89_v28 = vld [vmem:[#allocation3 + $0x60] sm:$0xff] }
  0x19   :  { %v90_v29 = vld [vmem:[#allocation3 + $0x68] sm:$0xff]  ;;  %v91_v30 = vld [vmem:[#allocation3 + $0x70] sm:$0xff]  ;;  %v92_v31 = vld [vmem:[#allocation3 + $0x78] sm:$0xff] }
  0x1a   :  { %146 = vmatpush.msra.mxu0 %v135_v5  ;;  %v93_v33 = vld [vmem:[#allocation3 + $0x80] sm:$0xff]  ;;  %v94_v35 = vld [vmem:[#allocation3 + $0x88] sm:$0xff]  ;;  %v95_v37 = vld [vmem:[#allocation3 + $0x90] sm:$0xff] }
  0x1b   :  { %v96_v39 = vld [vmem:[#allocation3 + $0x98] sm:$0xff]  ;;  %v97_v41 = vld [vmem:[#allocation3 + $0xa0] sm:$0xff]  ;;  %v98_v43 = vld [vmem:[#allocation3 + $0xa8] sm:$0xff] }
  0x1c   :  { %147 = vmatpush.msra.mxu0 %v134_v6  ;;  %v99_v45 = vld [vmem:[#allocation3 + $0xb0] sm:$0xff]  ;;  %v100_v47 = vld [vmem:[#allocation3 + $0xb8] sm:$0xff]  ;;  %v101_v49 = vld [vmem:[#allocation3 + $0xc0] sm:$0xff] }
  0x1d   :  { %v102_v51 = vld [vmem:[#allocation3 + $0xc8] sm:$0xff]  ;;  %v103_v53 = vld [vmem:[#allocation3 + $0xd0] sm:$0xff]  ;;  %v104_v55 = vld [vmem:[#allocation3 + $0xd8] sm:$0xff] }
  0x1e   :  { %148 = vmatpush.msra.mxu0 %v133_v7  ;;  %v105_v57 = vld [vmem:[#allocation3 + $0xe0] sm:$0xff]  ;;  %v106_v59 = vld [vmem:[#allocation3 + $0xe8] sm:$0xff]  ;;  %v107_v61 = vld [vmem:[#allocation3 + $0xf0] sm:$0xff] }
  0x1f   :  { %v108_v63 = vld [vmem:[#allocation3 + $0xf8] sm:$0xff]  ;;  %v109_v1 = vld [vmem:[#allocation3 + $0x100] sm:$0xff]  ;;  %v110_v3 = vld [vmem:[#allocation3 + $0x108] sm:$0xff] }
  0x20   :  { %149 = vmatpush.msra.mxu0 %v132_v8  ;;  %v111_v5 = vld [vmem:[#allocation3 + $0x110] sm:$0xff]  ;;  %v112_v7 = vld [vmem:[#allocation3 + $0x118] sm:$0xff] }
  0x22   :  { %150 = vmatpush.msra.mxu0 %v131_v9  ;;  %v113_v9 = vld [vmem:[#allocation3 + $0x120] sm:$0xff] }
  0x24   :  { %151 = vmatpush.msra.mxu0 %v130_v10 }
  0x26   :  { %152 = vmatpush.msra.mxu0 %v129_v11  ;;  %v114_v11 = vld [vmem:[#allocation3 + $0x128] sm:$0xff] }
  0x28   :  { %153 = vmatpush.msra.mxu0 %v128_v12 }
  0x2a   :  { %154 = vmatpush.msra.mxu0 %v127_v13  ;;  %v115_v13 = vld [vmem:[#allocation3 + $0x130] sm:$0xff] }
  0x2c   :  { %155 = vmatpush.msra.mxu0 %v126_v14 }
  0x2e   :  { %156 = vmatpush.msra.mxu0 %v125_v15  ;;  %v116_v15 = vld [vmem:[#allocation3 + $0x138] sm:$0xff] }
  0x2f   :  { %157 = vmatmul.f32.vlgmr.msra.gmra.mxu0 %v77_v16 }
  0x37   :  { %160 = vmatmul.f32.gmra.mxu0 %v78_v17  ;;  %v117_v17 = vld [vmem:[#allocation3 + $0x140] sm:$0xff] }
  0x3f   :  { %163 = vmatmul.f32.gmra.mxu0 %v79_v18 }
  0x47   :  { %166 = vmatmul.f32.gmra.mxu0 %v80_v19  ;;  %v118_v19 = vld [vmem:[#allocation3 + $0x148] sm:$0xff] }
  0x4f   :  { %169 = vmatmul.f32.gmra.mxu0 %v81_v20 }
  0x57   :  { %172 = vmatmul.f32.gmra.mxu0 %v82_v21  ;;  %v119_v21 = vld [vmem:[#allocation3 + $0x150] sm:$0xff] }
  0x5f   :  { %175 = vmatmul.f32.gmra.mxu0 %v83_v22 }
  0x67   :  { %178 = vmatmul.f32.gmra.mxu0 %v84_v23  ;;  %v120_v23 = vld [vmem:[#allocation3 + $0x158] sm:$0xff] }
  0x6f   :  { %181 = vmatmul.f32.gmra.mxu0 %v85_v24 }
  0x77   :  { %184 = vmatmul.f32.gmra.mxu0 %v86_v25  ;;  %v121_v25 = vld [vmem:[#allocation3 + $0x160] sm:$0xff] }
  0x7f   :  { %187 = vmatmul.f32.gmra.mxu0 %v87_v26 }
  0x87   :  { %190 = vmatmul.f32.gmra.mxu0 %v88_v27  ;;  %v122_v27 = vld [vmem:[#allocation3 + $0x168] sm:$0xff] }
  0x8f   :  { %193 = vmatmul.f32.gmra.mxu0 %v89_v28 }
  0x97   :  { %196 = vmatmul.f32.gmra.mxu0 %v90_v29  ;;  %v123_v29 = vld [vmem:[#allocation3 + $0x170] sm:$0xff] }
  0x9f   :  { %199 = vmatmul.f32.gmra.mxu0 %v91_v30 }
  0xa7   :  { %202 = vmatmul.f32.gmra.mxu0 %v92_v31  ;;  %v124_v31 = vld [vmem:[#allocation3 + $0x178] sm:$0xff] }
  0xac   :  { %v1410_v32 = vpop.f32.mrf.mxu0 }
  0xaf   :  { %205 = vmatmul.f32.gmra.mxu0 %v93_v33 }
  0xb4   :  { %v1412_v34 = vpop.f32.mrf.mxu0 }
  0xb7   :  { %208 = vmatmul.f32.gmra.mxu0 %v94_v35 }
  0xbc   :  { %v1414_v36 = vpop.f32.mrf.mxu0 }
  0xbf   :  { %211 = vmatmul.f32.gmra.mxu0 %v95_v37 }
  0xc4   :  { %v167_v38 = vpop.f32.mrf.mxu0 }
  0xc7   :  { %214 = vmatmul.f32.gmra.mxu0 %v96_v39 }
  0xcc   :  { %v170_v40 = vpop.f32.mrf.mxu0 }
  0xcf   :  { %217 = vmatmul.f32.gmra.mxu0 %v97_v41 }
  0xd4   :  { %v173_v42 = vpop.f32.mrf.mxu0 }
  0xd7   :  { %220 = vmatmul.f32.gmra.mxu0 %v98_v43 }
  0xdc   :  { %v176_v44 = vpop.f32.mrf.mxu0 }
  0xdf   :  { %223 = vmatmul.f32.gmra.mxu0 %v99_v45 }
  0xe4   :  { %v179_v46 = vpop.f32.mrf.mxu0 }
  0xe7   :  { %226 = vmatmul.f32.gmra.mxu0 %v100_v47  ;;  %v403_v47 = vld [vmem:[#allocation8 + $0x8] sm:$0xff] }
  0xec   :  { %v182_v48 = vpop.f32.mrf.mxu0 }
  0xef   :  { %229 = vmatmul.f32.gmra.mxu0 %v101_v49  ;;  %v402_v49 = vld [vmem:[#allocation8] sm:$0xff] }
  0xf4   :  { %v185_v50 = vpop.f32.mrf.mxu0 }
  0xf7   :  { %232 = vmatmul.f32.gmra.mxu0 %v102_v51  ;;  %v405_v51 = vld [vmem:[#allocation8 + $0x18] sm:$0xff] }
  0xfc   :  { %v188_v52 = vpop.f32.mrf.mxu0 }
  0xff   :  { %235 = vmatmul.f32.gmra.mxu0 %v103_v53  ;;  %v408_v53 = vld [vmem:[#allocation8 + $0x30] sm:$0xff] }
 0x104   :  { %v191_v54 = vpop.f32.mrf.mxu0 }
 0x107   :  { %238 = vmatmul.f32.gmra.mxu0 %v104_v55  ;;  %v411_v55 = vld [vmem:[#allocation8 + $0x48] sm:$0xff] }
 0x10c   :  { %v194_v56 = vpop.f32.mrf.mxu0 }
 0x10f   :  { %241 = vmatmul.f32.gmra.mxu0 %v105_v57  ;;  %v404_v57 = vld [vmem:[#allocation8 + $0x10] sm:$0xff] }
 0x114   :  { %v197_v58 = vpop.f32.mrf.mxu0 }
 0x117   :  { %244 = vmatmul.f32.gmra.mxu0 %v106_v59  ;;  %v418_v59 = vld [vmem:[#allocation8 + $0x80] sm:$0xff] }
 0x11c   :  { %v200_v60 = vpop.f32.mrf.mxu0 }
 0x11f   :  { %247 = vmatmul.f32.gmra.mxu0 %v107_v61  ;;  %v417_v61 = vld [vmem:[#allocation8 + $0x78] sm:$0xff] }
 0x124   :  { %v203_v62 = vpop.f32.mrf.mxu0 }
 0x125   :  { %546 = vmatpush.msra.mxu1 %v203_v62  ;;  %v421_v62 = vld [vmem:[#allocation8 + $0x98] sm:$0xff] }
 0x127   :  { %250 = vmatmul.f32.gmra.mxu0 %v108_v63  ;;  %547 = vmatpush.msra.mxu1 %v200_v60  ;;  %v407_v60 = vld [vmem:[#allocation8 + $0x28] sm:$0xff]  ;;  %v410_v63 = vld [vmem:[#allocation8 + $0x40] sm:$0xff] }
 0x129   :  { %548 = vmatpush.msra.mxu1 %v197_v58  ;;  %v414_v58 = vld [vmem:[#allocation8 + $0x60] sm:$0xff] }
 0x12b   :  { %549 = vmatpush.msra.mxu1 %v194_v56  ;;  %v415_v56 = vld [vmem:[#allocation8 + $0x68] sm:$0xff] }
 0x12c   :  { %v1416_v0 = vpop.f32.mrf.mxu0 }
 0x12d   :  { %550 = vmatpush.msra.mxu1 %v191_v54  ;;  %v412_v54 = vld [vmem:[#allocation8 + $0x50] sm:$0xff] }
 0x12f   :  { %253 = vmatmul.f32.gmra.mxu0 %v109_v1  ;;  %551 = vmatpush.msra.mxu1 %v188_v52  ;;  %v409_v52 = vld [vmem:[#allocation8 + $0x38] sm:$0xff]  ;;  %v424_v1 = vld [vmem:[#allocation8 + $0xb0] sm:$0xff] }
 0x131   :  { %552 = vmatpush.msra.mxu1 %v185_v50  ;;  %v406_v50 = vld [vmem:[#allocation8 + $0x20] sm:$0xff] }
 0x133   :  { %553 = vmatpush.msra.mxu1 %v182_v48 }
 0x134   :  { %v1418_v2 = vpop.f32.mrf.mxu0 }
 0x135   :  { %554 = vmatpush.msra.mxu1 %v179_v46 }
 0x137   :  { %256 = vmatmul.f32.gmra.mxu0 %v110_v3  ;;  %555 = vmatpush.msra.mxu1 %v176_v44  ;;  %v423_v3 = vld [vmem:[#allocation8 + $0xa8] sm:$0xff] }
 0x139   :  { %556 = vmatpush.msra.mxu1 %v173_v42 }
 0x13b   :  { %557 = vmatpush.msra.mxu1 %v170_v40 }
 0x13c   :  { %v212_v4 = vpop.f32.mrf.mxu0 }
 0x13d   :  { %558 = vmatpush.msra.mxu1 %v167_v38 }
 0x13f   :  { %259 = vmatmul.f32.gmra.mxu0 %v111_v5  ;;  %559 = vmatpush.msra.mxu1 %v1414_v36  ;;  %v416_v5 = vld [vmem:[#allocation8 + $0x70] sm:$0xff] }
 0x141   :  { %560 = vmatpush.msra.mxu1 %v1412_v34 }
 0x143   :  { %561 = vmatpush.msra.mxu1 %v1410_v32 }
 0x144   :  { %v215_v6 = vpop.f32.mrf.mxu0  ;;  %562 = vmatmul.f32.vlgmr.msra.gmra.mxu1 %v402_v49  ;;  %v452_v49 = vld [vmem:[#allocation8 + $0x190] sm:$0xff] }
 0x147   :  { %262 = vmatmul.f32.gmra.mxu0 %v112_v7  ;;  %v430_v7 = vld [vmem:[#allocation8 + $0xe0] sm:$0xff] }
 0x14c   :  { %v218_v8 = vpop.f32.mrf.mxu0  ;;  %565 = vmatmul.f32.gmra.mxu1 %v405_v51 }
 0x14f   :  { %265 = vmatmul.f32.gmra.mxu0 %v113_v9  ;;  %v429_v9 = vld [vmem:[#allocation8 + $0xd8] sm:$0xff] }
 0x154   :  { %v221_v10 = vpop.f32.mrf.mxu0  ;;  %568 = vmatmul.f32.gmra.mxu1 %v408_v53 }
 0x157   :  { %268 = vmatmul.f32.gmra.mxu0 %v114_v11  ;;  %v422_v11 = vld [vmem:[#allocation8 + $0xa0] sm:$0xff] }
 0x15c   :  { %v224_v12 = vpop.f32.mrf.mxu0  ;;  %571 = vmatmul.f32.gmra.mxu1 %v411_v55  ;;  %v462_v55 = vld [vmem:[#allocation8 + $0x1e0] sm:$0xff] }
 0x15f   :  { %271 = vmatmul.f32.gmra.mxu0 %v115_v13  ;;  %v436_v13 = vld [vmem:[#allocation8 + $0x110] sm:$0xff] }
 0x164   :  { %v227_v14 = vpop.f32.mrf.mxu0  ;;  %574 = vmatmul.f32.gmra.mxu1 %v414_v58  ;;  %v466_v58 = vld [vmem:[#allocation8 + $0x200] sm:$0xff] }
 0x167   :  { %274 = vmatmul.f32.gmra.mxu0 %v116_v15  ;;  %v435_v15 = vld [vmem:[#allocation8 + $0x108] sm:$0xff] }
 0x16c   :  { %v230_v16 = vpop.f32.mrf.mxu0  ;;  %577 = vmatmul.f32.gmra.mxu1 %v417_v61 }
 0x16f   :  { %277 = vmatmul.f32.gmra.mxu0 %v117_v17  ;;  %v428_v17 = vld [vmem:[#allocation8 + $0xd0] sm:$0xff] }
 0x174   :  { %v233_v18 = vpop.f32.mrf.mxu0 }
 0x177   :  { %280 = vmatmul.f32.gmra.mxu0 %v118_v19  ;;  %v442_v19 = vld [vmem:[#allocation8 + $0x140] sm:$0xff] }
 0x17c   :  { %v236_v20 = vpop.f32.mrf.mxu0 }
 0x17f   :  { %283 = vmatmul.f32.gmra.mxu0 %v119_v21  ;;  %v441_v21 = vld [vmem:[#allocation8 + $0x138] sm:$0xff] }
 0x184   :  { %v239_v22 = vpop.f32.mrf.mxu0 }
 0x187   :  { %286 = vmatmul.f32.gmra.mxu0 %v120_v23  ;;  %v434_v23 = vld [vmem:[#allocation8 + $0x100] sm:$0xff] }
 0x18c   :  { %v242_v24 = vpop.f32.mrf.mxu0 }
 0x18f   :  { %289 = vmatmul.f32.gmra.mxu0 %v121_v25  ;;  %v448_v25 = vld [vmem:[#allocation8 + $0x170] sm:$0xff] }
 0x194   :  { %v245_v26 = vpop.f32.mrf.mxu0 }
 0x197   :  { %292 = vmatmul.f32.gmra.mxu0 %v122_v27  ;;  %v447_v27 = vld [vmem:[#allocation8 + $0x168] sm:$0xff] }
 0x19c   :  { %v248_v28 = vpop.f32.mrf.mxu0 }
 0x19f   :  { %295 = vmatmul.f32.gmra.mxu0 %v123_v29  ;;  %v440_v29 = vld [vmem:[#allocation8 + $0x130] sm:$0xff] }
 0x1a4   :  { %v251_v30 = vpop.f32.mrf.mxu0 }
 0x1a5   :  { %707 = vmatpush.msra.mxu2 %v251_v30 }
 0x1a7   :  { %298 = vmatmul.f32.gmra.mxu0 %v124_v31  ;;  %708 = vmatpush.msra.mxu2 %v248_v28  ;;  %v451_v28 = vld [vmem:[#allocation8 + $0x188] sm:$0xff] }
 0x1a9   :  { %709 = vmatpush.msra.mxu2 %v245_v26  ;;  %v437_v26 = vld [vmem:[#allocation8 + $0x118] sm:$0xff] }
 0x1ab   :  { %710 = vmatpush.msra.mxu2 %v242_v24  ;;  %v444_v24 = vld [vmem:[#allocation8 + $0x150] sm:$0xff] }
 0x1ac   :  { %v254_v32 = vpop.f32.mrf.mxu0 }
 0x1ad   :  { %711 = vmatpush.msra.mxu2 %v239_v22  ;;  %v445_v22 = vld [vmem:[#allocation8 + $0x158] sm:$0xff] }
 0x1af   :  { %712 = vmatpush.msra.mxu2 %v236_v20  ;;  %v431_v20 = vld [vmem:[#allocation8 + $0xe8] sm:$0xff] }
 0x1b1   :  { %713 = vmatpush.msra.mxu2 %v233_v18  ;;  %v438_v18 = vld [vmem:[#allocation8 + $0x120] sm:$0xff] }
 0x1b3   :  { %714 = vmatpush.msra.mxu2 %v230_v16  ;;  %v439_v16 = vld [vmem:[#allocation8 + $0x128] sm:$0xff] }
 0x1b4   :  { %v257_v33 = vpop.f32.mrf.mxu0 }
 0x1b5   :  { %715 = vmatpush.msra.mxu2 %v227_v14  ;;  %v425_v14 = vld [vmem:[#allocation8 + $0xb8] sm:$0xff] }
 0x1b7   :  { %716 = vmatpush.msra.mxu2 %v224_v12  ;;  %v432_v12 = vld [vmem:[#allocation8 + $0xf0] sm:$0xff] }
 0x1b9   :  { %717 = vmatpush.msra.mxu2 %v221_v10  ;;  %v433_v10 = vld [vmem:[#allocation8 + $0xf8] sm:$0xff] }
 0x1bb   :  { %718 = vmatpush.msra.mxu2 %v218_v8  ;;  %v419_v8 = vld [vmem:[#allocation8 + $0x88] sm:$0xff] }
 0x1bc   :  { %v260_v34 = vpop.f32.mrf.mxu0 }
 0x1bd   :  { %719 = vmatpush.msra.mxu2 %v215_v6  ;;  %v426_v6 = vld [vmem:[#allocation8 + $0xc0] sm:$0xff] }
 0x1bf   :  { %720 = vmatpush.msra.mxu2 %v212_v4  ;;  %v427_v4 = vld [vmem:[#allocation8 + $0xc8] sm:$0xff] }
 0x1c1   :  { %721 = vmatpush.msra.mxu2 %v1418_v2  ;;  %v413_v2 = vld [vmem:[#allocation8 + $0x58] sm:$0xff]  ;;  %v563_v30 = vpop.f32.mrf.mxu1 }
 0x1c3   :  { %722 = vmatpush.msra.mxu2 %v1416_v0  ;;  %v420_v0 = vld [vmem:[#allocation8 + $0x90] sm:$0xff] }
 0x1c4   :  { %v263_v35 = vpop.f32.mrf.mxu0  ;;  %723 = vmatmul.f32.vlgmr.msra.gmra.mxu2 %v403_v47  ;;  %580 = vmatmul.f32.gmra.mxu1 %v420_v0  ;;  %v465_v0 = vld [vmem:[#allocation8 + $0x1f8] sm:$0xff] }
 0x1cc   :  { %v266_v36 = vpop.f32.mrf.mxu0  ;;  %726 = vmatmul.f32.gmra.mxu2 %v406_v50  ;;  %583 = vmatmul.f32.gmra.mxu1 %v423_v3  ;;  %v463_v50 = vld [vmem:[#allocation8 + $0x1e8] sm:$0xff]  ;;  %v469_v3 = vld [vmem:[#allocation8 + $0x218] sm:$0xff] }
 0x1d4   :  { %v269_v37 = vpop.f32.mrf.mxu0  ;;  %729 = vmatmul.f32.gmra.mxu2 %v409_v52  ;;  %586 = vmatmul.f32.gmra.mxu1 %v426_v6 }
 0x1dc   :  { %v272_v38 = vpop.f32.mrf.mxu0  ;;  %732 = vmatmul.f32.gmra.mxu2 %v412_v54  ;;  %589 = vmatmul.f32.gmra.mxu1 %v429_v9  ;;  %v468_v9 = vld [vmem:[#allocation8 + $0x210] sm:$0xff] }
 0x1e4   :  { %v275_v39 = vpop.f32.mrf.mxu0  ;;  %735 = vmatmul.f32.gmra.mxu2 %v415_v56  ;;  %592 = vmatmul.f32.gmra.mxu1 %v432_v12  ;;  %v472_v12 = vld [vmem:[#allocation8 + $0x230] sm:$0xff] }
 0x1ec   :  { %v278_v40 = vpop.f32.mrf.mxu0  ;;  %738 = vmatmul.f32.gmra.mxu2 %v418_v59  ;;  %595 = vmatmul.f32.gmra.mxu1 %v435_v15 }
 0x1f4   :  { %v281_v41 = vpop.f32.mrf.mxu0  ;;  %741 = vmatmul.f32.gmra.mxu2 %v421_v62  ;;  %598 = vmatmul.f32.gmra.mxu1 %v438_v18  ;;  %v471_v18 = vld [vmem:[#allocation8 + $0x228] sm:$0xff] }
 0x1fc   :  { %v284_v42 = vpop.f32.mrf.mxu0  ;;  %744 = vmatmul.f32.gmra.mxu2 %v424_v1  ;;  %601 = vmatmul.f32.gmra.mxu1 %v441_v21  ;;  %v475_v21 = vld [vmem:[#allocation8 + $0x248] sm:$0xff] }
 0x204   :  { %v287_v43 = vpop.f32.mrf.mxu0  ;;  %747 = vmatmul.f32.gmra.mxu2 %v427_v4  ;;  %604 = vmatmul.f32.gmra.mxu1 %v444_v24 }
 0x20c   :  { %v290_v44 = vpop.f32.mrf.mxu0  ;;  %750 = vmatmul.f32.gmra.mxu2 %v430_v7  ;;  %607 = vmatmul.f32.gmra.mxu1 %v447_v27  ;;  %v474_v27 = vld [vmem:[#allocation8 + $0x240] sm:$0xff] }
 0x214   :  { %v293_v45 = vpop.f32.mrf.mxu0  ;;  %753 = vmatmul.f32.gmra.mxu2 %v433_v10 }
 0x21c   :  { %v296_v46 = vpop.f32.mrf.mxu0  ;;  %756 = vmatmul.f32.gmra.mxu2 %v436_v13 }
 0x224   :  { %v299_v48 = vpop.f32.mrf.mxu0  ;;  %759 = vmatmul.f32.gmra.mxu2 %v439_v16 }
 0x225   :  { %868 = vmatpush.msra.mxu3 %v299_v48  ;;  %v459_v48 = vld [vmem:[#allocation8 + $0x1c8] sm:$0xff] }
 0x227   :  { %869 = vmatpush.msra.mxu3 %v296_v46 }
 0x229   :  { %870 = vmatpush.msra.mxu3 %v293_v45  ;;  %v460_v45 = vld [vmem:[#allocation8 + $0x1d0] sm:$0xff] }
 0x22b   :  { %871 = vmatpush.msra.mxu3 %v290_v44  ;;  %v449_v44 = vld [vmem:[#allocation8 + $0x178] sm:$0xff] }
 0x22c   :  { %762 = vmatmul.f32.gmra.mxu2 %v442_v19 }
 0x22d   :  { %872 = vmatpush.msra.mxu3 %v287_v43  ;;  %v456_v43 = vld [vmem:[#allocation8 + $0x1b0] sm:$0xff] }
 0x22f   :  { %873 = vmatpush.msra.mxu3 %v284_v42 }
 0x231   :  { %874 = vmatpush.msra.mxu3 %v281_v41 }
 0x233   :  { %875 = vmatpush.msra.mxu3 %v278_v40  ;;  %v457_v40 = vld [vmem:[#allocation8 + $0x1b8] sm:$0xff] }
 0x234   :  { %765 = vmatmul.f32.gmra.mxu2 %v445_v22 }
 0x235   :  { %876 = vmatpush.msra.mxu3 %v275_v39  ;;  %v446_v39 = vld [vmem:[#allocation8 + $0x160] sm:$0xff] }
 0x237   :  { %877 = vmatpush.msra.mxu3 %v272_v38  ;;  %v453_v38 = vld [vmem:[#allocation8 + $0x198] sm:$0xff] }
 0x239   :  { %878 = vmatpush.msra.mxu3 %v269_v37 }
 0x23b   :  { %879 = vmatpush.msra.mxu3 %v266_v36  ;;  %v566_v36 = vpop.f32.mrf.mxu1 }
 0x23c   :  { %768 = vmatmul.f32.gmra.mxu2 %v448_v25 }
 0x23d   :  { %880 = vmatpush.msra.mxu3 %v263_v35  ;;  %v454_v35 = vld [vmem:[#allocation8 + $0x1a0] sm:$0xff] }
 0x23f   :  { %881 = vmatpush.msra.mxu3 %v260_v34  ;;  %v443_v34 = vld [vmem:[#allocation8 + $0x148] sm:$0xff] }
 0x241   :  { %882 = vmatpush.msra.mxu3 %v257_v33  ;;  %v1428_v33 = vld [vmem:[%s1487_s3] ss:$0 sm:$0xff]  ;;  %s1369_s3 = smov [#allocation9]  }
 0x242   :  { %1077 = vst [vmem:[#allocation9 + $0x140] sm:$0xff] %v1428_v33  ;;  %s1233_s7 = sshll.u32 %s1369_s3, 4  ;;  %s1234_s7 = int_to_ptr.vmem [resolvable:$true] %s1233_s7 }
 0x243   :  { %883 = vmatpush.msra.mxu3 %v254_v32  ;;  %v450_v32 = vld [vmem:[#allocation8 + $0x180] sm:$0xff]  ;;  %1078 = vst [vmem:[#allocation9 + $0x148] sm:$0xff] %v1428_v33  ;;  %v569_v41 = vpop.f32.mrf.mxu1 }
 0x244   :  { %884 = vmatmul.f32.vlgmr.msra.gmra.mxu3 %v404_v57  ;;  %771 = vmatmul.f32.gmra.mxu2 %v451_v28  ;;  %1079 = vst [vmem:[#allocation9 + $0x150] sm:$0xff] %v1428_v33  ;;  %v455_v57 = vld [vmem:[#allocation8 + $0x1a8] sm:$0xff] }
 0x245   :  { %610 = vmatmul.f32.gmra.mxu1 %v450_v32  ;;  %1080 = vst [vmem:[#allocation9 + $0x158] sm:$0xff] %v1428_v33 }
 0x246   :  { %1081 = vst [vmem:[#allocation9 + $0x160] sm:$0xff] %v1428_v33 }
 0x247   :  { %v724_v31 = vpop.f32.mrf.mxu2  ;;  %1082 = vst [vmem:[#allocation9 + $0x168] sm:$0xff] %v1428_v33 }
 0x248   :  { %1083 = vst [vmem:[#allocation9 + $0x170] sm:$0xff] %v1428_v33  ;;  %v725_v51 = vadd.f32 %v724_v31, %v563_v30  ;;  %v478_v30 = vld [vmem:[#allocation8 + $0x260] sm:$0xff] }
 0x249   :  { %1084 = vst [vmem:[#allocation9 + $0x178] sm:$0xff] %v1428_v33 }
 0x24b   :  { %v572_v46 = vpop.f32.mrf.mxu1 }
 0x24c   :  { %887 = vmatmul.f32.gmra.mxu3 %v407_v60  ;;  %774 = vmatmul.f32.gmra.mxu2 %v454_v35 }
 0x24d   :  { %613 = vmatmul.f32.gmra.mxu1 %v453_v38 }
 0x24f   :  { %v727_v37 = vpop.f32.mrf.mxu2 }
 0x250   :  { %v728_v60 = vadd.f32 %v727_v37, %v566_v36  ;;  %v477_v37 = vld [vmem:[#allocation8 + $0x258] sm:$0xff] }
 0x253   :  { %v575_v52 = vpop.f32.mrf.mxu1 }
 0x254   :  { %890 = vmatmul.f32.gmra.mxu3 %v410_v63  ;;  %777 = vmatmul.f32.gmra.mxu2 %v457_v40  ;;  %v481_v40 = vld [vmem:[#allocation8 + $0x278] sm:$0xff] }
 0x255   :  { %616 = vmatmul.f32.gmra.mxu1 %v456_v43 }
 0x257   :  { %v730_v42 = vpop.f32.mrf.mxu2 }
 0x25b   :  { %v578_v61 = vpop.f32.mrf.mxu1 }
 0x25c   :  { %893 = vmatmul.f32.gmra.mxu3 %v413_v2  ;;  %780 = vmatmul.f32.gmra.mxu2 %v460_v45  ;;  %v458_v2 = vld [vmem:[#allocation8 + $0x1c0] sm:$0xff] }
 0x25d   :  { %619 = vmatmul.f32.gmra.mxu1 %v459_v48  ;;  %v473_v48 = vld [vmem:[#allocation8 + $0x238] sm:$0xff] }
 0x25f   :  { %v733_v47 = vpop.f32.mrf.mxu2 }
 0x263   :  { %v581_v6 = vpop.f32.mrf.mxu1 }
 0x264   :  { %896 = vmatmul.f32.gmra.mxu3 %v416_v5  ;;  %783 = vmatmul.f32.gmra.mxu2 %v463_v50  ;;  %v731_v5 = vadd.f32 %v730_v42, %v569_v41 }
 0x265   :  { %622 = vmatmul.f32.gmra.mxu1 %v462_v55  ;;  %v483_v55 = vld [vmem:[#allocation8 + $0x288] sm:$0xff] }
 0x267   :  { %v736_v53 = vpop.f32.mrf.mxu2 }
 0x26b   :  { %v584_v15 = vpop.f32.mrf.mxu1 }
 0x26c   :  { %899 = vmatmul.f32.gmra.mxu3 %v419_v8  ;;  %786 = vmatmul.f32.gmra.mxu2 %v466_v58  ;;  %v487_v58 = vld [vmem:[#allocation8 + $0x2a8] sm:$0xff] }
 0x26d   :  { %625 = vmatmul.f32.gmra.mxu1 %v465_v0  ;;  %v486_v0 = vld [vmem:[#allocation8 + $0x2a0] sm:$0xff] }
 0x26f   :  { %v739_v62 = vpop.f32.mrf.mxu2 }
 0x270   :  { %v740_v32 = vadd.f32 %v739_v62, %v578_v61 }
 0x273   :  { %v587_v24 = vpop.f32.mrf.mxu1 }
 0x274   :  { %902 = vmatmul.f32.gmra.mxu3 %v422_v11  ;;  %789 = vmatmul.f32.gmra.mxu2 %v469_v3  ;;  %v461_v11 = vld [vmem:[#allocation8 + $0x1d8] sm:$0xff]  ;;  %v490_v3 = vld [vmem:[#allocation8 + $0x2c0] sm:$0xff] }
 0x275   :  { %628 = vmatmul.f32.gmra.mxu1 %v468_v9  ;;  %v489_v9 = vld [vmem:[#allocation8 + $0x2b8] sm:$0xff] }
 0x277   :  { %v742_v7 = vpop.f32.mrf.mxu2 }
 0x278   :  { %v743_v42 = vadd.f32 %v742_v7, %v581_v6 }
 0x27c   :  { %905 = vmatmul.f32.gmra.mxu3 %v425_v14  ;;  %792 = vmatmul.f32.gmra.mxu2 %v472_v12  ;;  %v734_v14 = vadd.f32 %v733_v47, %v572_v46  ;;  %v480_v46 = vld [vmem:[#allocation8 + $0x270] sm:$0xff]  ;;  %v493_v12 = vld [vmem:[#allocation8 + $0x2d8] sm:$0xff] }
 0x27d   :  { %631 = vmatmul.f32.gmra.mxu1 %v471_v18  ;;  %v492_v18 = vld [vmem:[#allocation8 + $0x2d0] sm:$0xff] }
 0x27f   :  { %v745_v16 = vpop.f32.mrf.mxu2 }
 0x284   :  { %908 = vmatmul.f32.gmra.mxu3 %v428_v17  ;;  %795 = vmatmul.f32.gmra.mxu2 %v475_v21  ;;  %v496_v21 = vld [vmem:[#allocation8 + $0x2f0] sm:$0xff] }
 0x285   :  { %634 = vmatmul.f32.gmra.mxu1 %v474_v27  ;;  %v495_v27 = vld [vmem:[#allocation8 + $0x2e8] sm:$0xff] }
 0x287   :  { %v748_v25 = vpop.f32.mrf.mxu2 }
 0x28c   :  { %911 = vmatmul.f32.gmra.mxu3 %v431_v20  ;;  %v464_v20 = vld [vmem:[#allocation8 + $0x1f0] sm:$0xff]  ;;  %798 = vmatmul.f32.gmra.mxu2 %v478_v30  ;;  %v499_v30 = vld [vmem:[#allocation8 + $0x308] sm:$0xff] }
 0x28d   :  { %637 = vmatmul.f32.gmra.mxu1 %v477_v37  ;;  %v498_v37 = vld [vmem:[#allocation8 + $0x300] sm:$0xff] }
 0x28f   :  { %v751_v35 = vpop.f32.mrf.mxu2 }
 0x294   :  { %914 = vmatmul.f32.gmra.mxu3 %v434_v23  ;;  %v737_v23 = vadd.f32 %v736_v53, %v575_v52  ;;  %801 = vmatmul.f32.gmra.mxu2 %v481_v40  ;;  %v502_v40 = vld [vmem:[#allocation8 + $0x320] sm:$0xff] }
 0x295   :  { %640 = vmatmul.f32.gmra.mxu1 %v480_v46  ;;  %v501_v46 = vld [vmem:[#allocation8 + $0x318] sm:$0xff] }
 0x29c   :  { %917 = vmatmul.f32.gmra.mxu3 %v437_v26 }
 0x29d   :  { %643 = vmatmul.f32.gmra.mxu1 %v483_v55  ;;  %v504_v55 = vld [vmem:[#allocation8 + $0x330] sm:$0xff] }
 0x2a4   :  { %920 = vmatmul.f32.gmra.mxu3 %v440_v29  ;;  %v467_v29 = vld [vmem:[#allocation8 + $0x208] sm:$0xff] }
 0x2a5   :  { %646 = vmatmul.f32.gmra.mxu1 %v486_v0  ;;  %v507_v0 = vld [vmem:[#allocation8 + $0x348] sm:$0xff] }
 0x2ac   :  { %923 = vmatmul.f32.gmra.mxu3 %v443_v34  ;;  %v590_v34 = vpop.f32.mrf.mxu1 }
 0x2ad   :  { %649 = vmatmul.f32.gmra.mxu1 %v489_v9  ;;  %v510_v9 = vld [vmem:[#allocation8 + $0x360] sm:$0xff] }
 0x2b4   :  { %926 = vmatmul.f32.gmra.mxu3 %v446_v39  ;;  %v470_v39 = vld [vmem:[#allocation8 + $0x220] sm:$0xff]  ;;  %v593_v43 = vpop.f32.mrf.mxu1 }
 0x2b5   :  { %652 = vmatmul.f32.gmra.mxu1 %v492_v18  ;;  %v513_v18 = vld [vmem:[#allocation8 + $0x378] sm:$0xff] }
 0x2bc   :  { %929 = vmatmul.f32.gmra.mxu3 %v449_v44  ;;  %v754_v44 = vpop.f32.mrf.mxu2  ;;  %v596_v52 = vpop.f32.mrf.mxu1 }
 0x2bd   :  { %655 = vmatmul.f32.gmra.mxu1 %v495_v27  ;;  %v516_v27 = vld [vmem:[#allocation8 + $0x390] sm:$0xff] }
 0x2c4   :  { %932 = vmatmul.f32.gmra.mxu3 %v452_v49  ;;  %v484_v49 = vld [vmem:[#allocation8 + $0x290] sm:$0xff]  ;;  %v757_v53 = vpop.f32.mrf.mxu2  ;;  %v599_v61 = vpop.f32.mrf.mxu1 }
 0x2c5   :  { %804 = vmatmul.f32.gmra.mxu2 %v484_v49  ;;  %658 = vmatmul.f32.gmra.mxu1 %v498_v37  ;;  %v505_v49 = vld [vmem:[#allocation8 + $0x338] sm:$0xff]  ;;  %v519_v37 = vld [vmem:[#allocation8 + $0x3a8] sm:$0xff] }
 0x2c7   :  { %v885_v54 = vpop.f32.mrf.mxu3 }
 0x2c8   :  { %v886_v56 = vadd.f32 %v885_v54, %v725_v51  ;;  %v746_v51 = vadd.f32 %v745_v16, %v584_v15 }
 0x2ca   :  { %v1133_v59 = vadd.f32 %v1428_v33, %v886_v56 }
 0x2cc   :  { %1181 = vst [vmem:[#allocation9] sm:$0xff] %v1133_v59  ;;  %935 = vmatmul.f32.gmra.mxu3 %v455_v57  ;;  %v476_v57 = vld [vmem:[#allocation8 + $0x250] sm:$0xff]  ;;  %v760_v62 = vpop.f32.mrf.mxu2  ;;  %v602_v6 = vpop.f32.mrf.mxu1 }
 0x2cd   :  { %807 = vmatmul.f32.gmra.mxu2 %v487_v58  ;;  %661 = vmatmul.f32.gmra.mxu1 %v501_v46  ;;  %v508_v58 = vld [vmem:[#allocation8 + $0x350] sm:$0xff]  ;;  %v522_v46 = vld [vmem:[#allocation8 + $0x3c0] sm:$0xff] }
 0x2cf   :  { %v888_v63 = vpop.f32.mrf.mxu3 }
 0x2d0   :  { %v889_v1 = vadd.f32 %v888_v63, %v728_v60  ;;  %v749_v60 = vadd.f32 %v748_v25, %v587_v24 }
 0x2d2   :  { %v1134_v4 = vadd.f32 %v1428_v33, %v889_v1 }
 0x2d4   :  { %1182 = vst [vmem:[#allocation9 + $0x8] sm:$0xff] %v1134_v4  ;;  %938 = vmatmul.f32.gmra.mxu3 %v458_v2  ;;  %v479_v2 = vld [vmem:[#allocation8 + $0x268] sm:$0xff]  ;;  %v763_v7 = vpop.f32.mrf.mxu2  ;;  %v605_v15 = vpop.f32.mrf.mxu1 }
 0x2d5   :  { %810 = vmatmul.f32.gmra.mxu2 %v490_v3  ;;  %664 = vmatmul.f32.gmra.mxu1 %v504_v55  ;;  %v511_v3 = vld [vmem:[#allocation8 + $0x368] sm:$0xff]  ;;  %v525_v55 = vld [vmem:[#allocation8 + $0x3d8] sm:$0xff] }
 0x2d7   :  { %v891_v8 = vpop.f32.mrf.mxu3 }
 0x2d8   :  { %v892_v10 = vadd.f32 %v891_v8, %v731_v5  ;;  %v752_v5 = vadd.f32 %v751_v35, %v590_v34 }
 0x2da   :  { %v1135_v13 = vadd.f32 %v1428_v33, %v892_v10 }
 0x2dc   :  { %1183 = vst [vmem:[#allocation9 + $0x10] sm:$0xff] %v1135_v13  ;;  %941 = vmatmul.f32.gmra.mxu3 %v461_v11  ;;  %v482_v11 = vld [vmem:[#allocation8 + $0x280] sm:$0xff]  ;;  %v766_v16 = vpop.f32.mrf.mxu2  ;;  %v608_v24 = vpop.f32.mrf.mxu1 }
 0x2dd   :  { %813 = vmatmul.f32.gmra.mxu2 %v493_v12  ;;  %667 = vmatmul.f32.gmra.mxu1 %v507_v0  ;;  %v514_v12 = vld [vmem:[#allocation8 + $0x380] sm:$0xff]  ;;  %v528_v0 = vld [vmem:[#allocation8 + $0x3f0] sm:$0xff] }
 0x2df   :  { %v894_v17 = vpop.f32.mrf.mxu3 }
 0x2e0   :  { %v895_v19 = vadd.f32 %v894_v17, %v734_v14  ;;  %v755_v14 = vadd.f32 %v754_v44, %v593_v43 }
 0x2e2   :  { %v1136_v22 = vadd.f32 %v1428_v33, %v895_v19 }
 0x2e4   :  { %1184 = vst [vmem:[#allocation9 + $0x18] sm:$0xff] %v1136_v22  ;;  %944 = vmatmul.f32.gmra.mxu3 %v464_v20  ;;  %v485_v20 = vld [vmem:[#allocation8 + $0x298] sm:$0xff]  ;;  %v769_v25 = vpop.f32.mrf.mxu2  ;;  %v611_v34 = vpop.f32.mrf.mxu1 }
 0x2e5   :  { %816 = vmatmul.f32.gmra.mxu2 %v496_v21  ;;  %670 = vmatmul.f32.gmra.mxu1 %v510_v9  ;;  %v517_v21 = vld [vmem:[#allocation8 + $0x398] sm:$0xff]  ;;  %v531_v9 = vld [vmem:[#allocation8 + $0x408] sm:$0xff] }
 0x2e7   :  { %v897_v26 = vpop.f32.mrf.mxu3 }
 0x2e8   :  { %v898_v28 = vadd.f32 %v897_v26, %v737_v23  ;;  %v758_v23 = vadd.f32 %v757_v53, %v596_v52 }
 0x2ea   :  { %v1137_v31 = vadd.f32 %v1428_v33, %v898_v28 }
 0x2ec   :  { %1185 = vst [vmem:[#allocation9 + $0x20] sm:$0xff] %v1137_v31  ;;  %947 = vmatmul.f32.gmra.mxu3 %v467_v29  ;;  %v488_v29 = vld [vmem:[#allocation8 + $0x2b0] sm:$0xff]  ;;  %v772_v35 = vpop.f32.mrf.mxu2  ;;  %v614_v43 = vpop.f32.mrf.mxu1 }
 0x2ed   :  { %819 = vmatmul.f32.gmra.mxu2 %v499_v30  ;;  %673 = vmatmul.f32.gmra.mxu1 %v513_v18  ;;  %v520_v30 = vld [vmem:[#allocation8 + $0x3b0] sm:$0xff]  ;;  %v534_v18 = vld [vmem:[#allocation8 + $0x420] sm:$0xff] }
 0x2ef   :  { %v900_v36 = vpop.f32.mrf.mxu3 }
 0x2f0   :  { %v901_v38 = vadd.f32 %v900_v36, %v740_v32  ;;  %v761_v32 = vadd.f32 %v760_v62, %v599_v61 }
 0x2f2   :  { %v1138_v41 = vadd.f32 %v1428_v33, %v901_v38 }
 0x2f4   :  { %1186 = vst [vmem:[#allocation9 + $0x28] sm:$0xff] %v1138_v41  ;;  %950 = vmatmul.f32.gmra.mxu3 %v470_v39  ;;  %v491_v39 = vld [vmem:[#allocation8 + $0x2c8] sm:$0xff]  ;;  %v775_v44 = vpop.f32.mrf.mxu2  ;;  %v617_v52 = vpop.f32.mrf.mxu1 }
 0x2f5   :  { %822 = vmatmul.f32.gmra.mxu2 %v502_v40  ;;  %676 = vmatmul.f32.gmra.mxu1 %v516_v27  ;;  %v523_v40 = vld [vmem:[#allocation8 + $0x3c8] sm:$0xff]  ;;  %v537_v27 = vld [vmem:[#allocation8 + $0x438] sm:$0xff] }
 0x2f7   :  { %v903_v45 = vpop.f32.mrf.mxu3 }
 0x2f8   :  { %v904_v47 = vadd.f32 %v903_v45, %v743_v42  ;;  %v764_v42 = vadd.f32 %v763_v7, %v602_v6 }
 0x2fa   :  { %v1139_v50 = vadd.f32 %v1428_v33, %v904_v47 }
 0x2fc   :  { %1187 = vst [vmem:[#allocation9 + $0x30] sm:$0xff] %v1139_v50  ;;  %953 = vmatmul.f32.gmra.mxu3 %v473_v48  ;;  %v494_v48 = vld [vmem:[#allocation8 + $0x2e0] sm:$0xff]  ;;  %v778_v53 = vpop.f32.mrf.mxu2  ;;  %v620_v61 = vpop.f32.mrf.mxu1 }
 0x2fd   :  { %825 = vmatmul.f32.gmra.mxu2 %v505_v49  ;;  %679 = vmatmul.f32.gmra.mxu1 %v519_v37  ;;  %v526_v49 = vld [vmem:[#allocation8 + $0x3e0] sm:$0xff]  ;;  %v540_v37 = vld [vmem:[#allocation8 + $0x450] sm:$0xff] }
 0x2ff   :  { %v906_v54 = vpop.f32.mrf.mxu3 }
 0x300   :  { %v907_v56 = vadd.f32 %v906_v54, %v746_v51  ;;  %v767_v51 = vadd.f32 %v766_v16, %v605_v15 }
 0x302   :  { %v1140_v59 = vadd.f32 %v1428_v33, %v907_v56 }
 0x304   :  { %1188 = vst [vmem:[#allocation9 + $0x38] sm:$0xff] %v1140_v59  ;;  %956 = vmatmul.f32.gmra.mxu3 %v476_v57  ;;  %v497_v57 = vld [vmem:[#allocation8 + $0x2f8] sm:$0xff]  ;;  %v781_v62 = vpop.f32.mrf.mxu2  ;;  %v623_v6 = vpop.f32.mrf.mxu1 }
 0x305   :  { %828 = vmatmul.f32.gmra.mxu2 %v508_v58  ;;  %682 = vmatmul.f32.gmra.mxu1 %v522_v46  ;;  %v529_v58 = vld [vmem:[#allocation8 + $0x3f8] sm:$0xff]  ;;  %v543_v46 = vld [vmem:[#allocation8 + $0x468] sm:$0xff] }
 0x307   :  { %v909_v63 = vpop.f32.mrf.mxu3 }
 0x308   :  { %v910_v1 = vadd.f32 %v909_v63, %v749_v60  ;;  %v770_v60 = vadd.f32 %v769_v25, %v608_v24 }
 0x30a   :  { %v1141_v4 = vadd.f32 %v1428_v33, %v910_v1 }
 0x30c   :  { %1189 = vst [vmem:[#allocation9 + $0x40] sm:$0xff] %v1141_v4  ;;  %959 = vmatmul.f32.gmra.mxu3 %v479_v2  ;;  %v500_v2 = vld [vmem:[#allocation8 + $0x310] sm:$0xff]  ;;  %v784_v7 = vpop.f32.mrf.mxu2  ;;  %v626_v15 = vpop.f32.mrf.mxu1 }
 0x30d   :  { %831 = vmatmul.f32.gmra.mxu2 %v511_v3  ;;  %685 = vmatmul.f32.gmra.mxu1 %v525_v55  ;;  %v532_v3 = vld [vmem:[#allocation8 + $0x410] sm:$0xff]  ;;  %v539_v55 = vld [vmem:[#allocation8 + $0x448] sm:$0xff] }
 0x30f   :  { %v912_v8 = vpop.f32.mrf.mxu3 }
 0x310   :  { %v913_v10 = vadd.f32 %v912_v8, %v752_v5  ;;  %v773_v5 = vadd.f32 %v772_v35, %v611_v34 }
 0x312   :  { %v1142_v13 = vadd.f32 %v1428_v33, %v913_v10 }
 0x314   :  { %1190 = vst [vmem:[#allocation9 + $0x48] sm:$0xff] %v1142_v13  ;;  %962 = vmatmul.f32.gmra.mxu3 %v482_v11  ;;  %v503_v11 = vld [vmem:[#allocation8 + $0x328] sm:$0xff]  ;;  %v787_v16 = vpop.f32.mrf.mxu2  ;;  %v629_v24 = vpop.f32.mrf.mxu1 }
 0x315   :  { %834 = vmatmul.f32.gmra.mxu2 %v514_v12  ;;  %688 = vmatmul.f32.gmra.mxu1 %v528_v0  ;;  %v535_v12 = vld [vmem:[#allocation8 + $0x428] sm:$0xff] }
 0x317   :  { %v915_v17 = vpop.f32.mrf.mxu3 }
 0x318   :  { %v916_v19 = vadd.f32 %v915_v17, %v755_v14  ;;  %v776_v14 = vadd.f32 %v775_v44, %v614_v43 }
 0x31a   :  { %v1143_v22 = vadd.f32 %v1428_v33, %v916_v19 }
 0x31c   :  { %1191 = vst [vmem:[#allocation9 + $0x50] sm:$0xff] %v1143_v22  ;;  %965 = vmatmul.f32.gmra.mxu3 %v485_v20  ;;  %v506_v20 = vld [vmem:[#allocation8 + $0x340] sm:$0xff]  ;;  %v790_v25 = vpop.f32.mrf.mxu2  ;;  %v632_v34 = vpop.f32.mrf.mxu1 }
 0x31d   :  { %837 = vmatmul.f32.gmra.mxu2 %v517_v21  ;;  %691 = vmatmul.f32.gmra.mxu1 %v531_v9  ;;  %v538_v21 = vld [vmem:[#allocation8 + $0x440] sm:$0xff] }
 0x31f   :  { %v918_v26 = vpop.f32.mrf.mxu3 }
 0x320   :  { %v919_v28 = vadd.f32 %v918_v26, %v758_v23  ;;  %v779_v23 = vadd.f32 %v778_v53, %v617_v52 }
 0x322   :  { %v1144_v31 = vadd.f32 %v1428_v33, %v919_v28 }
 0x324   :  { %1192 = vst [vmem:[#allocation9 + $0x58] sm:$0xff] %v1144_v31  ;;  %968 = vmatmul.f32.gmra.mxu3 %v488_v29  ;;  %v509_v29 = vld [vmem:[#allocation8 + $0x358] sm:$0xff]  ;;  %v793_v35 = vpop.f32.mrf.mxu2  ;;  %v635_v43 = vpop.f32.mrf.mxu1 }
 0x325   :  { %840 = vmatmul.f32.gmra.mxu2 %v520_v30  ;;  %694 = vmatmul.f32.gmra.mxu1 %v534_v18  ;;  %v541_v30 = vld [vmem:[#allocation8 + $0x458] sm:$0xff] }
 0x327   :  { %v921_v36 = vpop.f32.mrf.mxu3 }
 0x328   :  { %v922_v38 = vadd.f32 %v921_v36, %v761_v32  ;;  %v782_v32 = vadd.f32 %v781_v62, %v620_v61 }
 0x32a   :  { %v1145_v41 = vadd.f32 %v1428_v33, %v922_v38 }
 0x32c   :  { %1193 = vst [vmem:[#allocation9 + $0x60] sm:$0xff] %v1145_v41  ;;  %971 = vmatmul.f32.gmra.mxu3 %v491_v39  ;;  %v512_v39 = vld [vmem:[#allocation8 + $0x370] sm:$0xff]  ;;  %v796_v44 = vpop.f32.mrf.mxu2  ;;  %v638_v52 = vpop.f32.mrf.mxu1 }
 0x32d   :  { %843 = vmatmul.f32.gmra.mxu2 %v523_v40  ;;  %697 = vmatmul.f32.gmra.mxu1 %v537_v27  ;;  %v544_v40 = vld [vmem:[#allocation8 + $0x470] sm:$0xff] }
 0x32f   :  { %v924_v45 = vpop.f32.mrf.mxu3 }
 0x330   :  { %v925_v47 = vadd.f32 %v924_v45, %v764_v42  ;;  %v785_v42 = vadd.f32 %v784_v7, %v623_v6 }
 0x332   :  { %v1146_v50 = vadd.f32 %v1428_v33, %v925_v47 }
 0x334   :  { %1194 = vst [vmem:[#allocation9 + $0x68] sm:$0xff] %v1146_v50  ;;  %974 = vmatmul.f32.gmra.mxu3 %v494_v48  ;;  %v515_v48 = vld [vmem:[#allocation8 + $0x388] sm:$0xff]  ;;  %v799_v53 = vpop.f32.mrf.mxu2  ;;  %v641_v61 = vpop.f32.mrf.mxu1 }
 0x335   :  { %846 = vmatmul.f32.gmra.mxu2 %v526_v49  ;;  %700 = vmatmul.f32.gmra.mxu1 %v540_v37 }
 0x337   :  { %v927_v54 = vpop.f32.mrf.mxu3 }
 0x338   :  { %v928_v56 = vadd.f32 %v927_v54, %v767_v51  ;;  %v788_v51 = vadd.f32 %v787_v16, %v626_v15 }
 0x33a   :  { %v1147_v59 = vadd.f32 %v1428_v33, %v928_v56 }
 0x33c   :  { %1195 = vst [vmem:[#allocation9 + $0x70] sm:$0xff] %v1147_v59  ;;  %977 = vmatmul.f32.gmra.mxu3 %v497_v57  ;;  %v518_v57 = vld [vmem:[#allocation8 + $0x3a0] sm:$0xff]  ;;  %v802_v62 = vpop.f32.mrf.mxu2  ;;  %v644_v6 = vpop.f32.mrf.mxu1 }
 0x33d   :  { %849 = vmatmul.f32.gmra.mxu2 %v529_v58  ;;  %703 = vmatmul.f32.gmra.mxu1 %v543_v46 }
 0x33f   :  { %v930_v63 = vpop.f32.mrf.mxu3 }
 0x340   :  { %v931_v1 = vadd.f32 %v930_v63, %v770_v60  ;;  %v791_v60 = vadd.f32 %v790_v25, %v629_v24 }
 0x342   :  { %v1148_v4 = vadd.f32 %v1428_v33, %v931_v1 }
 0x344   :  { %1196 = vst [vmem:[#allocation9 + $0x78] sm:$0xff] %v1148_v4  ;;  %980 = vmatmul.f32.gmra.mxu3 %v500_v2  ;;  %v521_v2 = vld [vmem:[#allocation8 + $0x3b8] sm:$0xff]  ;;  %v647_v15 = vpop.f32.mrf.mxu1 }
 0x345   :  { %852 = vmatmul.f32.gmra.mxu2 %v532_v3 }
 0x347   :  { %v933_v8 = vpop.f32.mrf.mxu3 }
 0x348   :  { %v934_v10 = vadd.f32 %v933_v8, %v773_v5  ;;  %v794_v5 = vadd.f32 %v793_v35, %v632_v34  ;;  %v805_v7 = vpop.f32.mrf.mxu2 }
 0x34a   :  { %v1149_v13 = vadd.f32 %v1428_v33, %v934_v10 }
 0x34c   :  { %1197 = vst [vmem:[#allocation9 + $0x80] sm:$0xff] %v1149_v13  ;;  %983 = vmatmul.f32.gmra.mxu3 %v503_v11  ;;  %v524_v11 = vld [vmem:[#allocation8 + $0x3d0] sm:$0xff]  ;;  %v650_v24 = vpop.f32.mrf.mxu1 }
 0x34d   :  { %855 = vmatmul.f32.gmra.mxu2 %v535_v12 }
 0x34f   :  { %v936_v17 = vpop.f32.mrf.mxu3 }
 0x350   :  { %v937_v19 = vadd.f32 %v936_v17, %v776_v14  ;;  %v797_v14 = vadd.f32 %v796_v44, %v635_v43  ;;  %v808_v16 = vpop.f32.mrf.mxu2 }
 0x352   :  { %v1150_v22 = vadd.f32 %v1428_v33, %v937_v19 }
 0x354   :  { %1198 = vst [vmem:[#allocation9 + $0x88] sm:$0xff] %v1150_v22  ;;  %986 = vmatmul.f32.gmra.mxu3 %v506_v20  ;;  %v527_v20 = vld [vmem:[#allocation8 + $0x3e8] sm:$0xff]  ;;  %v653_v34 = vpop.f32.mrf.mxu1 }
 0x355   :  { %858 = vmatmul.f32.gmra.mxu2 %v538_v21 }
 0x357   :  { %v939_v26 = vpop.f32.mrf.mxu3 }
 0x358   :  { %v940_v28 = vadd.f32 %v939_v26, %v779_v23  ;;  %v800_v23 = vadd.f32 %v799_v53, %v638_v52  ;;  %v811_v25 = vpop.f32.mrf.mxu2 }
 0x35a   :  { %v1151_v31 = vadd.f32 %v1428_v33, %v940_v28 }
 0x35c   :  { %1199 = vst [vmem:[#allocation9 + $0x90] sm:$0xff] %v1151_v31  ;;  %989 = vmatmul.f32.gmra.mxu3 %v509_v29  ;;  %v530_v29 = vld [vmem:[#allocation8 + $0x400] sm:$0xff]  ;;  %v656_v43 = vpop.f32.mrf.mxu1 }
 0x35d   :  { %861 = vmatmul.f32.gmra.mxu2 %v541_v30 }
 0x35f   :  { %v942_v36 = vpop.f32.mrf.mxu3 }
 0x360   :  { %v943_v38 = vadd.f32 %v942_v36, %v782_v32  ;;  %v803_v32 = vadd.f32 %v802_v62, %v641_v61  ;;  %v814_v35 = vpop.f32.mrf.mxu2  ;;  %v542_v62 = vld [vmem:[#allocation8 + $0x460] sm:$0xff] }
 0x361   :  { %v815_v0 = vadd.f32 %v814_v35, %v653_v34 }
 0x362   :  { %v1152_v41 = vadd.f32 %v1428_v33, %v943_v38 }
 0x364   :  { %1200 = vst [vmem:[#allocation9 + $0x98] sm:$0xff] %v1152_v41  ;;  %992 = vmatmul.f32.gmra.mxu3 %v512_v39  ;;  %v533_v39 = vld [vmem:[#allocation8 + $0x418] sm:$0xff] }
 0x365   :  { %864 = vmatmul.f32.gmra.mxu2 %v544_v40 }
 0x367   :  { %v945_v45 = vpop.f32.mrf.mxu3 }
 0x368   :  { %v946_v47 = vadd.f32 %v945_v45, %v785_v42  ;;  %v806_v42 = vadd.f32 %v805_v7, %v644_v6  ;;  %v817_v44 = vpop.f32.mrf.mxu2 }
 0x369   :  { %v818_v7 = vadd.f32 %v817_v44, %v656_v43 }
 0x36a   :  { %v1153_v50 = vadd.f32 %v1428_v33, %v946_v47 }
 0x36c   :  { %1201 = vst [vmem:[#allocation9 + $0xa0] sm:$0xff] %v1153_v50  ;;  %995 = vmatmul.f32.gmra.mxu3 %v515_v48  ;;  %v536_v48 = vld [vmem:[#allocation8 + $0x430] sm:$0xff]  ;;  %v809_v50 = vadd.f32 %v808_v16, %v647_v15 }
 0x36f   :  { %v948_v54 = vpop.f32.mrf.mxu3 }
 0x370   :  { %v949_v56 = vadd.f32 %v948_v54, %v788_v51  ;;  %v659_v51 = vpop.f32.mrf.mxu1  ;;  %v820_v52 = vpop.f32.mrf.mxu2 }
 0x372   :  { %v1154_v59 = vadd.f32 %v1428_v33, %v949_v56 }
 0x374   :  { %1202 = vst [vmem:[#allocation9 + $0xa8] sm:$0xff] %v1154_v59  ;;  %998 = vmatmul.f32.gmra.mxu3 %v518_v57  ;;  %v812_v57 = vadd.f32 %v811_v25, %v650_v24 }
 0x377   :  { %v951_v63 = vpop.f32.mrf.mxu3 }
 0x378   :  { %v952_v1 = vadd.f32 %v951_v63, %v791_v60  ;;  %v662_v58 = vpop.f32.mrf.mxu1  ;;  %v823_v59 = vpop.f32.mrf.mxu2 }
 0x37a   :  { %v1155_v4 = vadd.f32 %v1428_v33, %v952_v1 }
 0x37c   :  { %1203 = vst [vmem:[#allocation9 + $0xb0] sm:$0xff] %v1155_v4  ;;  %1001 = vmatmul.f32.gmra.mxu3 %v521_v2 }
 0x37f   :  { %v954_v8 = vpop.f32.mrf.mxu3 }
 0x380   :  { %v955_v10 = vadd.f32 %v954_v8, %v794_v5  ;;  %v665_v1 = vpop.f32.mrf.mxu1  ;;  %v826_v3 = vpop.f32.mrf.mxu2  ;;  %v545_v5 = vld [vmem:[#allocation8 + $0x478] sm:$0xff] }
 0x382   :  { %v1156_v13 = vadd.f32 %v1428_v33, %v955_v10 }
 0x384   :  { %1204 = vst [vmem:[#allocation9 + $0xb8] sm:$0xff] %v1156_v13  ;;  %1004 = vmatmul.f32.gmra.mxu3 %v524_v11  ;;  %v821_v13 = vadd.f32 %v820_v52, %v659_v51 }
 0x387   :  { %v957_v17 = vpop.f32.mrf.mxu3 }
 0x388   :  { %v958_v19 = vadd.f32 %v957_v17, %v797_v14  ;;  %v668_v10 = vpop.f32.mrf.mxu1  ;;  %v829_v11 = vpop.f32.mrf.mxu2 }
 0x38a   :  { %v1157_v22 = vadd.f32 %v1428_v33, %v958_v19  ;;  %v824_v19 = vadd.f32 %v823_v59, %v662_v58 }
 0x38c   :  { %1205 = vst [vmem:[#allocation9 + $0xc0] sm:$0xff] %v1157_v22  ;;  %1007 = vmatmul.f32.gmra.mxu3 %v527_v20 }
 0x38f   :  { %v960_v26 = vpop.f32.mrf.mxu3 }
 0x390   :  { %v961_v28 = vadd.f32 %v960_v26, %v800_v23  ;;  %v671_v17 = vpop.f32.mrf.mxu1  ;;  %v832_v18 = vpop.f32.mrf.mxu2  ;;  %v827_v23 = vadd.f32 %v826_v3, %v665_v1  ;;  %v1126_v3 = vld [vmem:[#allocation9 + $0x148] sm:$0xff] }
 0x392   :  { %v1158_v31 = vadd.f32 %v1428_v33, %v961_v28 }
 0x394   :  { %1206 = vst [vmem:[#allocation9 + $0xc8] sm:$0xff] %v1158_v31  ;;  %1010 = vmatmul.f32.gmra.mxu3 %v530_v29  ;;  %v830_v29 = vadd.f32 %v829_v11, %v668_v10 }
 0x397   :  { %v963_v36 = vpop.f32.mrf.mxu3 }
 0x398   :  { %v964_v38 = vadd.f32 %v963_v36, %v803_v32  ;;  %v674_v24 = vpop.f32.mrf.mxu1  ;;  %v835_v25 = vpop.f32.mrf.mxu2  ;;  %v833_v36 = vadd.f32 %v832_v18, %v671_v17 }
 0x39a   :  { %v1159_v41 = vadd.f32 %v1428_v33, %v964_v38 }
 0x39c   :  { %1207 = vst [vmem:[#allocation9 + $0xd0] sm:$0xff] %v1159_v41  ;;  %1013 = vmatmul.f32.gmra.mxu3 %v533_v39 }
 0x39f   :  { %v966_v45 = vpop.f32.mrf.mxu3 }
 0x3a0   :  { %v967_v47 = vadd.f32 %v966_v45, %v806_v42  ;;  %v677_v30 = vpop.f32.mrf.mxu1  ;;  %v838_v32 = vpop.f32.mrf.mxu2  ;;  %v836_v42 = vadd.f32 %v835_v25, %v674_v24 }
 0x3a2   :  { %v1160_v49 = vadd.f32 %v1428_v33, %v967_v47 }
 0x3a4   :  { %1208 = vst [vmem:[#allocation9 + $0xd8] sm:$0xff] %v1160_v49  ;;  %1016 = vmatmul.f32.gmra.mxu3 %v536_v48  ;;  %v839_v48 = vadd.f32 %v838_v32, %v677_v30 }
 0x3a7   :  { %v969_v53 = vpop.f32.mrf.mxu3 }
 0x3a8   :  { %v970_v54 = vadd.f32 %v969_v53, %v809_v50  ;;  %v680_v39 = vpop.f32.mrf.mxu1  ;;  %v841_v40 = vpop.f32.mrf.mxu2 }
 0x3a9   :  { %v842_v52 = vadd.f32 %v841_v40, %v680_v39 }
 0x3aa   :  { %v1161_v56 = vadd.f32 %v1428_v33, %v970_v54 }
 0x3ac   :  { %1209 = vst [vmem:[#allocation9 + $0xe0] sm:$0xff] %v1161_v56  ;;  %1019 = vmatmul.f32.gmra.mxu3 %v539_v55 }
 0x3af   :  { %v972_v60 = vpop.f32.mrf.mxu3 }
 0x3b0   :  { %v973_v61 = vadd.f32 %v972_v60, %v812_v57  ;;  %v683_v46 = vpop.f32.mrf.mxu1  ;;  %v844_v47 = vpop.f32.mrf.mxu2 }
 0x3b1   :  { %v845_v58 = vadd.f32 %v844_v47, %v683_v46 }
 0x3b2   :  { %v1162_v63 = vadd.f32 %v1428_v33, %v973_v61  ;;  %v1125_v61 = vld [vmem:[#allocation9 + $0x140] sm:$0xff] }
 0x3b4   :  { %1210 = vst [vmem:[#allocation9 + $0xe8] sm:$0xff] %v1162_v63  ;;  %1022 = vmatmul.f32.gmra.mxu3 %v542_v62 }
 0x3b7   :  { %v975_v2 = vpop.f32.mrf.mxu3 }
 0x3b8   :  { %v976_v4 = vadd.f32 %v975_v2, %v815_v0  ;;  %v686_v53 = vpop.f32.mrf.mxu1  ;;  %v847_v54 = vpop.f32.mrf.mxu2 }
 0x3b9   :  { %v848_v1 = vadd.f32 %v847_v54, %v686_v53 }
 0x3ba   :  { %v1163_v6 = vadd.f32 %v1428_v33, %v976_v4 }
 0x3bc   :  { %1211 = vst [vmem:[#allocation9 + $0xf0] sm:$0xff] %v1163_v6  ;;  %1025 = vmatmul.f32.gmra.mxu3 %v545_v5 }
 0x3bf   :  { %v978_v8 = vpop.f32.mrf.mxu3 }
 0x3c0   :  { %v979_v9 = vadd.f32 %v978_v8, %v818_v7  ;;  %v689_v59 = vpop.f32.mrf.mxu1  ;;  %v850_v62 = vpop.f32.mrf.mxu2 }
 0x3c1   :  { %v851_v8 = vadd.f32 %v850_v62, %v689_v59 }
 0x3c2   :  { %v1164_v12 = vadd.f32 %v1428_v33, %v979_v9 }
 0x3c4   :  { %1212 = vst [vmem:[#allocation9 + $0xf8] sm:$0xff] %v1164_v12 }
 0x3c7   :  { %v981_v14 = vpop.f32.mrf.mxu3 }
 0x3c8   :  { %v982_v15 = vadd.f32 %v981_v14, %v821_v13  ;;  %v692_v5 = vpop.f32.mrf.mxu1  ;;  %v853_v6 = vpop.f32.mrf.mxu2 }
 0x3c9   :  { %v854_v14 = vadd.f32 %v853_v6, %v692_v5 }
 0x3ca   :  { %v1165_v16 = vadd.f32 %v1428_v33, %v982_v15 }
 0x3cc   :  { %1213 = vst [vmem:[#allocation9 + $0x100] sm:$0xff] %v1165_v16  ;;  %v1128_v16 = vld [vmem:[#allocation9 + $0x158] sm:$0xff] }
 0x3cf   :  { %v984_v20 = vpop.f32.mrf.mxu3 }
 0x3d0   :  { %v985_v21 = vadd.f32 %v984_v20, %v824_v19  ;;  %v695_v12 = vpop.f32.mrf.mxu1  ;;  %v856_v13 = vpop.f32.mrf.mxu2 }
 0x3d1   :  { %v857_v19 = vadd.f32 %v856_v13, %v695_v12 }
 0x3d2   :  { %v1166_v22 = vadd.f32 %v1428_v33, %v985_v21 }
 0x3d4   :  { %1214 = vst [vmem:[#allocation9 + $0x108] sm:$0xff] %v1166_v22 }
 0x3d7   :  { %v987_v26 = vpop.f32.mrf.mxu3 }
 0x3d8   :  { %v988_v27 = vadd.f32 %v987_v26, %v827_v23  ;;  %v698_v20 = vpop.f32.mrf.mxu1  ;;  %v859_v21 = vpop.f32.mrf.mxu2  ;;  %v1129_v23 = vld [vmem:[#allocation9 + $0x160] sm:$0xff] }
 0x3d9   :  { %v860_v26 = vadd.f32 %v859_v21, %v698_v20 }
 0x3da   :  { %v1167_v28 = vadd.f32 %v1428_v33, %v988_v27 }
 0x3dc   :  { %1215 = vst [vmem:[#allocation9 + $0x110] sm:$0xff] %v1167_v28 }
 0x3df   :  { %v990_v31 = vpop.f32.mrf.mxu3 }
 0x3e0   :  { %v991_v34 = vadd.f32 %v990_v31, %v830_v29  ;;  %v701_v27 = vpop.f32.mrf.mxu1  ;;  %v1130_v29 = vld [vmem:[#allocation9 + $0x168] sm:$0xff]  ;;  %v862_v30 = vpop.f32.mrf.mxu2 }
 0x3e2   :  { %v1168_v35 = vadd.f32 %v1428_v33, %v991_v34  ;;  %v863_v34 = vadd.f32 %v862_v30, %v701_v27 }
 0x3e4   :  { %1216 = vst [vmem:[#allocation9 + $0x118] sm:$0xff] %v1168_v35 }
 0x3e7   :  { %v993_v37 = vpop.f32.mrf.mxu3 }
 0x3e8   :  { %v994_v38 = vadd.f32 %v993_v37, %v833_v36  ;;  %v1131_v36 = vld [vmem:[#allocation9 + $0x170] sm:$0xff]  ;;  %v865_v39 = vpop.f32.mrf.mxu2 }
 0x3ea   :  { %v1169_v41 = vadd.f32 %v1428_v33, %v994_v38  ;;  %v704_v38 = vpop.f32.mrf.mxu1 }
 0x3ec   :  { %1217 = vst [vmem:[#allocation9 + $0x120] sm:$0xff] %v1169_v41  ;;  %v866_v41 = vadd.f32 %v865_v39, %v704_v38 }
 0x3ef   :  { %v996_v43 = vpop.f32.mrf.mxu3 }
 0x3f0   :  { %v997_v44 = vadd.f32 %v996_v43, %v836_v42  ;;  %v1132_v43 = vld [vmem:[#allocation9 + $0x178] sm:$0xff] }
 0x3f2   :  { %v1170_v45 = vadd.f32 %v1428_v33, %v997_v44 }
 0x3f4   :  { %1218 = vst [vmem:[#allocation9 + $0x128] sm:$0xff] %v1170_v45 }
 0x3f7   :  { %v999_v49 = vpop.f32.mrf.mxu3 }
 0x3f8   :  { %v1000_v50 = vadd.f32 %v999_v49, %v839_v48 }
 0x3fa   :  { %v1171_v51 = vadd.f32 %v1428_v33, %v1000_v50 }
 0x3fc   :  { %1219 = vst [vmem:[#allocation9 + $0x130] sm:$0xff] %v1171_v51 }
 0x3ff   :  { %v1002_v55 = vpop.f32.mrf.mxu3 }
 0x400   :  { %v1003_v56 = vadd.f32 %v1002_v55, %v842_v52 }
 0x402   :  { %v1172_v57 = vadd.f32 %v1428_v33, %v1003_v56  ;;  %v1127_v33 = vld [vmem:[#allocation9 + $0x150] sm:$0xff] }
 0x404   :  { %1220 = vst [vmem:[#allocation9 + $0x138] sm:$0xff] %v1172_v57 }
 0x407   :  { %v1005_v60 = vpop.f32.mrf.mxu3 }
 0x408   :  { %v1006_v63 = vadd.f32 %v1005_v60, %v845_v58 }
 0x40a   :  { %v1173_v0 = vadd.f32 %v1125_v61, %v1006_v63 }
 0x40c   :  { %1221 = vst [vmem:[#allocation9 + $0x140] sm:$0xff] %v1173_v0 }
 0x40f   :  { %v1008_v2 = vpop.f32.mrf.mxu3 }
 0x410   :  { %v1009_v4 = vadd.f32 %v1008_v2, %v848_v1 }
 0x412   :  { %v1174_v7 = vadd.f32 %v1126_v3, %v1009_v4 }
 0x414   :  { %1222 = vst [vmem:[#allocation9 + $0x148] sm:$0xff] %v1174_v7 }
 0x417   :  { %v1011_v9 = vpop.f32.mrf.mxu3 }
 0x418   :  { %v1012_v10 = vadd.f32 %v1011_v9, %v851_v8 }
 0x41a   :  { %v1175_v11 = vadd.f32 %v1127_v33, %v1012_v10 }
 0x41c   :  { %1223 = vst [vmem:[#allocation9 + $0x150] sm:$0xff] %v1175_v11 }
 0x41f   :  { %v1014_v15 = vpop.f32.mrf.mxu3 }
 0x420   :  { %v1015_v17 = vadd.f32 %v1014_v15, %v854_v14 }
 0x422   :  { %v1176_v18 = vadd.f32 %v1128_v16, %v1015_v17 }
 0x424   :  { %1224 = vst [vmem:[#allocation9 + $0x158] sm:$0xff] %v1176_v18 }
 0x427   :  { %v1017_v22 = vpop.f32.mrf.mxu3 }
 0x428   :  { %v1018_v24 = vadd.f32 %v1017_v22, %v857_v19 }
 0x42a   :  { %v1177_v25 = vadd.f32 %v1129_v23, %v1018_v24 }
 0x42c   :  { %1225 = vst [vmem:[#allocation9 + $0x160] sm:$0xff] %v1177_v25 }
 0x42f   :  { %v1020_v28 = vpop.f32.mrf.mxu3 }
 0x430   :  { %v1021_v31 = vadd.f32 %v1020_v28, %v860_v26 }
 0x432   :  { %v1178_v32 = vadd.f32 %v1130_v29, %v1021_v31 }
 0x434   :  { %1226 = vst [vmem:[#allocation9 + $0x168] sm:$0xff] %v1178_v32 }
 0x437   :  { %v1023_v35 = vpop.f32.mrf.mxu3 }
 0x438   :  { %v1024_v37 = vadd.f32 %v1023_v35, %v863_v34 }
 0x43a   :  { %v1179_v40 = vadd.f32 %v1131_v36, %v1024_v37 }
 0x43c   :  { %1227 = vst [vmem:[#allocation9 + $0x170] sm:$0xff] %v1179_v40 }
 0x43f   :  { %v1026_v42 = vpop.f32.mrf.mxu3 }
 0x440   :  { %v1027_v44 = vadd.f32 %v1026_v42, %v866_v41 }
 0x442   :  { %v1180_v45 = vadd.f32 %v1132_v43, %v1027_v44 }
 0x444   :  { %1228 = vst [vmem:[#allocation9 + $0x178] sm:$0xff] %v1180_v45 }
 0x445   :  { %1241 = dma.vmem_to_hbm [thread:$0]  %s1234_s7, 6144, %s1236_s10, [#allocation5], %s1363_s23, %s1363_s23, %s1364_s24  }
 0x446   :  { %1360 = dma.done.wait [#allocation5], 6144  }
 0x447   :  { %1361 = vsyncadd [#allocation5], 4294961152 }
 0x448   :  { %1246 = vsyncpa [#allocation4], 1 }
 0x449   :  { %1247 = vsyncpa [#allocation7], 1 }
 0x44a   :  { %1248 = vsyncpa [#allocation5], 1 }

</bundles_post_ra>
